<compile_context>
chip_gen: v7x
topology: tpu7x:2x2x1
jax: 0.10.0
libtpu: 0.0.40
codegen_flags: <defaults>
</compile_context>

<pallas_src>
import functools

import numpy as np
import jax
import jax.numpy as jnp
from jax import lax
from jax.experimental import pallas as pl
from jax.experimental.pallas import tpu as pltpu

LEAKY_SLOPE = 0.01   # nn.LeakyReLU default
BN_EPS = 1e-5        # nn.BatchNorm default eps

C1 = 256             # conv1 output channels
C2 = 128             # conv2 output channels
K1 = 16              # conv1 im2col contraction (9 taps + 1 bias col + pad)


def _round_up(v, m):
    return ((v + m - 1) // m) * m


# --------------------------------------------------------------------------
# Fused Pallas kernel: whole CNN forward for B samples per grid step
# --------------------------------------------------------------------------
def _cnn_fused_kernel(p_ref, w1_ref, s1_ref, t1_ref,
                      w2_ref, b2_ref, s2_ref, t2_ref, o_ref,
                      *, B, G, L2, L3):
    """
    Row layout inside a tile is position-major, batch-minor (batch is the
    sublane-dense minor factor, B % 8 == 0), so every slice below is a dense,
    sublane-aligned block.

    p_ref : (1, 4*G*B, K1) f32  conv1 patches; row j*G*B + e*B + b = sample b,
                                conv1 position 4e+j; col 9 is the ones column.
    w1_ref: (K1, C1)       f32  conv1 weight (+ bias row 9, zero pad rows).
    s1/t1 : (1, C1)        f32  folded BatchNorm2d scale / shift (eval mode).
    w2_ref: (4*C1, C2)     f32  conv2 weight, rows = tap-major, in-channel minor.
    b2/s2/t2: (1, C2)      f32  conv2 bias, folded BatchNorm1d scale / shift.
    o_ref : (1, L3*B, C2)  f32  dense output slab; row p*B + b = sample b, pos p.
    """
    GB = G * B
    L2B = L2 * B

    # ---- conv1: Conv2d(1,C1,(3,3),stride=(1,2)) + bias as ONE MXU matmul ----
    y1 = jnp.dot(p_ref[0], w1_ref[...], preferred_element_type=jnp.float32)
    y1 = jnp.maximum(y1, LEAKY_SLOPE * y1)              # LeakyReLU (single vmax)
    y1 = y1 * s1_ref[...] + t1_ref[...]                 # BatchNorm2d (eval)

    # ---- MaxPool2d((1,2),(1,2)): even / odd pooled sub-sequences ----
    ae = jnp.maximum(y1[0:GB], y1[GB:2 * GB])            # pooled pos 0,2,4,...
    ao = jnp.maximum(y1[2 * GB:3 * GB], y1[3 * GB:4 * GB])  # pooled pos 1,3,5,...

    # ---- conv2: Conv1d(C1,C2,4,stride=2) as ONE K=1024 MXU matmul ----
    lhs = jnp.concatenate(
        [ae[0:L2B], ao[0:L2B], ae[B:L2B + B], ao[B:L2B + B]], axis=1)
    y2 = jnp.dot(lhs, w2_ref[...], preferred_element_type=jnp.float32)
    y2 = y2 + b2_ref[...]
    y2 = jnp.maximum(y2, LEAKY_SLOPE * y2)               # LeakyReLU
    y2 = y2 * s2_ref[...] + t2_ref[...]                  # BatchNorm1d (eval)

    # ---- MaxPool1d(3, stride=2): dense (B, C2) slab maxes + aligned stores ----
    for p in range(L3):
        r0 = 2 * p * B
        blk = jnp.maximum(jnp.maximum(y2[r0:r0 + B], y2[r0 + B:r0 + 2 * B]),
                          y2[r0 + 2 * B:r0 + 3 * B])
        o_ref[0, p * B:(p + 1) * B, :] = blk


# --------------------------------------------------------------------------
# Parameters (PyTorch-default init, eval-mode BN buffers)
# --------------------------------------------------------------------------
def init_params(key):
    ks = jax.random.split(key, 4)

    def u(k, shape, fan_in):
        bound = 1.0 / np.sqrt(fan_in)
        return jax.random.uniform(k, shape, jnp.float32, -bound, bound)

    p = {}
    # cnn1: Conv2d(1, 256, (3,3), stride=(1,2)) + BatchNorm2d(256)
    p["conv1_w"] = u(ks[0], (C1, 1, 3, 3), 9)
    p["conv1_b"] = u(ks[1], (C1,), 9)
    p["bn1_gamma"] = jnp.ones((C1,), jnp.float32)
    p["bn1_beta"] = jnp.zeros((C1,), jnp.float32)
    p["bn1_mean"] = jnp.zeros((C1,), jnp.float32)
    p["bn1_var"] = jnp.ones((C1,), jnp.float32)
    # cnn2: Conv1d(256, 128, 4, stride=2) + BatchNorm1d(128)
    p["conv2_w"] = u(ks[2], (C2, C1, 4), C1 * 4)
    p["conv2_b"] = u(ks[3], (C2,), C1 * 4)
    p["bn2_gamma"] = jnp.ones((C2,), jnp.float32)
    p["bn2_beta"] = jnp.zeros((C2,), jnp.float32)
    p["bn2_mean"] = jnp.zeros((C2,), jnp.float32)
    p["bn2_var"] = jnp.ones((C2,), jnp.float32)
    return p


# --------------------------------------------------------------------------
# Wrapper: layout plumbing + single pallas_call
# --------------------------------------------------------------------------
def cnn_forward(params, x, *, batch_tile=64):
    """x: (N, 1, 3, W) f32 -> (N, 128, L3), matching PyTorch CNN.forward."""
    N, Cin, H, W = x.shape
    assert Cin == 1 and H == 3, "CNN expects (N,1,3,W) so Conv2d (3,3) leaves one row"
    Wout1 = (W - 3) // 2 + 1            # conv1 output width
    P1 = (Wout1 // 2) * 2               # conv1 positions consumed by MaxPool2d
    assert P1 % 4 == 0, "width must give a pooled length divisible by 2 (4-way interleave)"
    G = P1 // 4                         # rows per interleave group (pooled len = 2G)
    L2 = G - 1                          # Conv1d output length
    L3 = (L2 - 3) // 2 + 1              # MaxPool1d output length
    assert L2 >= 3, "input width too small for Conv1d(4,2) + MaxPool1d(3,2)"

    # Batch tile: multiple of 8 (sublane dense). For large N keep several tiles
    # so v7x's two TensorCores each get "parallel" blocks.
    B = min(_round_up(max(batch_tile, 1), 8), _round_up(N, 8))
    n_tiles = pl.cdiv(N, B)
    N_pad = n_tiles * B

    # ---- im2col for conv1 (tiny), bias folded in via a ones column ----
    pos = jnp.arange(P1)
    cols = 2 * pos[:, None] + jnp.arange(3)[None, :]              # (P1, 3)
    xs = x[:, 0, :, :].astype(jnp.float32)                        # (N, 3, W)
    patches = xs[:, :, cols]                                      # (N, 3, P1, 3)
    patches = patches.transpose(0, 2, 1, 3).reshape(N, P1, 9)     # (kh, kw) flat
    patches = jnp.concatenate(
        [patches,
         jnp.ones((N, P1, 1), jnp.float32),                       # bias column
         jnp.zeros((N, P1, K1 - 10), jnp.float32)], axis=-1)      # pad K to 16
    patches = jnp.pad(patches, ((0, N_pad - N), (0, 0), (0, 0)))
    # Per-tile row order: group-major, position-major, batch-minor.
    patches = (patches.reshape(n_tiles, B, G, 4, K1)
                       .transpose(0, 3, 2, 1, 4)
                       .reshape(n_tiles, 4 * G * B, K1))

    # ---- weights / eval-mode BN folding ----
    w1 = params["conv1_w"].reshape(C1, 9).T.astype(jnp.float32)          # (9, C1)
    w1 = jnp.concatenate(
        [w1, params["conv1_b"].astype(jnp.float32)[None, :],
         jnp.zeros((K1 - 10, C1), jnp.float32)], axis=0)                 # (16, C1)
    s1 = params["bn1_gamma"] / jnp.sqrt(params["bn1_var"] + BN_EPS)
    t1 = params["bn1_beta"] - params["bn1_mean"] * s1
    w2 = params["conv2_w"].transpose(2, 1, 0).reshape(4 * C1, C2)        # (1024, 128)
    w2 = w2.astype(jnp.float32)
    s2 = params["bn2_gamma"] / jnp.sqrt(params["bn2_var"] + BN_EPS)
    t2 = params["bn2_beta"] - params["bn2_mean"] * s2

    row = lambda v: v.reshape(1, -1).astype(jnp.float32)

    kernel = functools.partial(_cnn_fused_kernel, B=B, G=G, L2=L2, L3=L3)

    out = pl.pallas_call(
        kernel,
        out_shape=jax.ShapeDtypeStruct((n_tiles, L3 * B, C2), jnp.float32),
        grid=(n_tiles,),
        in_specs=[
            pl.BlockSpec((1, 4 * G * B, K1), lambda i: (i, 0, 0)),
            pl.BlockSpec((K1, C1), lambda i: (0, 0)),
            pl.BlockSpec((1, C1), lambda i: (0, 0)),
            pl.BlockSpec((1, C1), lambda i: (0, 0)),
            pl.BlockSpec((4 * C1, C2), lambda i: (0, 0)),
            pl.BlockSpec((1, C2), lambda i: (0, 0)),
            pl.BlockSpec((1, C2), lambda i: (0, 0)),
            pl.BlockSpec((1, C2), lambda i: (0, 0)),
        ],
        out_specs=pl.BlockSpec((1, L3 * B, C2), lambda i: (i, 0, 0)),
        compiler_params=pltpu.CompilerParams(dimension_semantics=("parallel",)),
    )(patches, w1, row(s1), row(t1), w2, row(params["conv2_b"]), row(s2), row(t2))

    # Kernel writes lane/sublane-dense (tile, pos*B + b, C2); restore (N, C2, L3).
    out = (out.reshape(n_tiles, L3, B, C2)
              .transpose(0, 2, 3, 1)
              .reshape(N_pad, C2, L3))
    return out[:N]


# --------------------------------------------------------------------------
# Pure-XLA reference (f32) for a correctness sanity check
# --------------------------------------------------------------------------
def _reference_cnn(params, x):
    y = lax.conv_general_dilated(x, params["conv1_w"], (1, 2), "VALID",
                                 dimension_numbers=("NCHW", "OIHW", "NCHW"),
                                 precision=lax.Precision.HIGHEST)
    y = y + params["conv1_b"][None, :, None, None]
    y = jnp.where(y >= 0.0, y, LEAKY_SLOPE * y)
    s1 = params["bn1_gamma"] / jnp.sqrt(params["bn1_var"] + BN_EPS)
    y = (y - params["bn1_mean"][None, :, None, None]) * s1[None, :, None, None] \
        + params["bn1_beta"][None, :, None, None]
    y = lax.reduce_window(y, -jnp.inf, lax.max, (1, 1, 1, 2), (1, 1, 1, 2), "VALID")
    y = y[:, :, 0, :]                                             # squeeze(2)
    y = lax.conv_general_dilated(y, params["conv2_w"], (2,), "VALID",
                                 dimension_numbers=("NCH", "OIH", "NCH"),
                                 precision=lax.Precision.HIGHEST)
    y = y + params["conv2_b"][None, :, None]
    y = jnp.where(y >= 0.0, y, LEAKY_SLOPE * y)
    s2 = params["bn2_gamma"] / jnp.sqrt(params["bn2_var"] + BN_EPS)
    y = (y - params["bn2_mean"][None, :, None]) * s2[None, :, None] \
        + params["bn2_beta"][None, :, None]
    y = lax.reduce_window(y, -jnp.inf, lax.max, (1, 1, 3), (1, 1, 2), "VALID")
    return y


# --------------------------------------------------------------------------
if __name__ == "__main__":
    key = jax.random.PRNGKey(0)
    kx, kp = jax.random.split(key)
    params = init_params(kp)

    # CNNLSTM feeds (B*T, 1, 3, 100) windows; small demo batch first.
    N, W = 2, 100
    x = jax.random.normal(kx, (N, 1, 3, W), dtype=jnp.float32)

    out = jax.jit(cnn_forward)(params, x)
    jax.block_until_ready(out)
    assert out.shape == (N, C2, 5), out.shape
    assert bool(jnp.all(jnp.isfinite(out)))
    ref = _reference_cnn(params, x)
    max_err = float(jnp.max(jnp.abs(out - ref)))
    assert max_err < 2e-2, f"max abs err vs XLA reference: {max_err}"

    # Larger batch: exercises multiple parallel grid tiles + tail padding.
    N2 = 40
    x2 = jax.random.normal(jax.random.PRNGKey(1), (N2, 1, 3, W), dtype=jnp.float32)
    out2 = jax.jit(lambda p, z: cnn_forward(p, z, batch_tile=16))(params, x2)
    jax.block_until_ready(out2)
    assert out2.shape == (N2, C2, 5), out2.shape
    ref2 = _reference_cnn(params, x2)
    max_err2 = float(jnp.max(jnp.abs(out2 - ref2)))
    assert max_err2 < 2e-2, f"max abs err vs XLA reference (batched): {max_err2}"

    print("KERNEL_OK")
</pallas_src>

<mosaic_0001>
module attributes {stable_mosaic.version = 11 : i64} {
  func.func @_cnn_fused_kernel(%arg0: i32, %arg1: memref<1x384x16xf32, #tpu.memory_space<vmem>>, %arg2: memref<16x256xf32, #tpu.memory_space<vmem>>, %arg3: memref<1x256xf32, #tpu.memory_space<vmem>>, %arg4: memref<1x256xf32, #tpu.memory_space<vmem>>, %arg5: memref<1024x128xf32, #tpu.memory_space<vmem>>, %arg6: memref<1x128xf32, #tpu.memory_space<vmem>>, %arg7: memref<1x128xf32, #tpu.memory_space<vmem>>, %arg8: memref<1x128xf32, #tpu.memory_space<vmem>>, %arg9: memref<1x40x128xf32, #tpu.memory_space<vmem>>) attributes {dimension_semantics = [#tpu.dimension_semantics<parallel>], iteration_bounds = array<i64: 1>, scalar_prefetch = 0 : i64, scratch_operands = 0 : i64, tpu.core_type = #tpu.core_type<tc>, window_params = [{transform_indices = @transform_0, window_bounds = array<i64: 1, 384, 16>}, {pipeline_mode = #tpu.pipeline_mode<synchronous>, transform_indices = @transform_1, window_bounds = array<i64: 16, 256>}, {pipeline_mode = #tpu.pipeline_mode<synchronous>, transform_indices = @transform_2, window_bounds = array<i64: 1, 256>}, {pipeline_mode = #tpu.pipeline_mode<synchronous>, transform_indices = @transform_3, window_bounds = array<i64: 1, 256>}, {pipeline_mode = #tpu.pipeline_mode<synchronous>, transform_indices = @transform_4, window_bounds = array<i64: 1024, 128>}, {pipeline_mode = #tpu.pipeline_mode<synchronous>, transform_indices = @transform_5, window_bounds = array<i64: 1, 128>}, {pipeline_mode = #tpu.pipeline_mode<synchronous>, transform_indices = @transform_6, window_bounds = array<i64: 1, 128>}, {pipeline_mode = #tpu.pipeline_mode<synchronous>, transform_indices = @transform_7, window_bounds = array<i64: 1, 128>}, {transform_indices = @transform_8, window_bounds = array<i64: 1, 40, 128>}]} {
    %c0 = arith.constant 0 : index
    %c0_0 = arith.constant 0 : index
    %c0_1 = arith.constant 0 : index
    %0 = vector.load %arg1[%c0, %c0_0, %c0_1] : memref<1x384x16xf32, #tpu.memory_space<vmem>>, vector<1x384x16xf32>
    %1 = vector.shape_cast %0 : vector<1x384x16xf32> to vector<384x16xf32>
    %c0_2 = arith.constant 0 : index
    %c0_3 = arith.constant 0 : index
    %2 = vector.load %arg2[%c0_2, %c0_3] : memref<16x256xf32, #tpu.memory_space<vmem>>, vector<16x256xf32>
    %cst = arith.constant dense<0.000000e+00> : vector<384x256xf32>
    %3 = tpu.matmul %1, %2, %cst {dimension_numbers = #tpu.dot_dimension_numbers<[1], [0], [0], [1], [0, 0, 1, 1], [], []>} : vector<384x16xf32>, vector<16x256xf32>, vector<384x256xf32> -> vector<384x256xf32>
    %cst_4 = arith.constant 0.00999999977 : f32
    %4 = vector.broadcast %cst_4 : f32 to vector<384x256xf32>
    %5 = arith.mulf %4, %3 : vector<384x256xf32>
    %6 = arith.maximumf %3, %5 : vector<384x256xf32>
    %c0_5 = arith.constant 0 : index
    %c0_6 = arith.constant 0 : index
    %7 = vector.load %arg3[%c0_5, %c0_6] : memref<1x256xf32, #tpu.memory_space<vmem>>, vector<1x256xf32>
    %8 = vector.broadcast %7 : vector<1x256xf32> to vector<384x256xf32>
    %9 = arith.mulf %6, %8 : vector<384x256xf32>
    %c0_7 = arith.constant 0 : index
    %c0_8 = arith.constant 0 : index
    %10 = vector.load %arg4[%c0_7, %c0_8] : memref<1x256xf32, #tpu.memory_space<vmem>>, vector<1x256xf32>
    %11 = vector.broadcast %10 : vector<1x256xf32> to vector<384x256xf32>
    %12 = arith.addf %9, %11 : vector<384x256xf32>
    %13 = vector.extract_strided_slice %12 {offsets = [0, 0], sizes = [96, 256], strides = [1, 1]} : vector<384x256xf32> to vector<96x256xf32>
    %14 = vector.extract_strided_slice %12 {offsets = [96, 0], sizes = [96, 256], strides = [1, 1]} : vector<384x256xf32> to vector<96x256xf32>
    %15 = arith.maximumf %13, %14 : vector<96x256xf32>
    %16 = vector.extract_strided_slice %12 {offsets = [192, 0], sizes = [96, 256], strides = [1, 1]} : vector<384x256xf32> to vector<96x256xf32>
    %17 = vector.extract_strided_slice %12 {offsets = [288, 0], sizes = [96, 256], strides = [1, 1]} : vector<384x256xf32> to vector<96x256xf32>
    %18 = arith.maximumf %16, %17 : vector<96x256xf32>
    %19 = vector.extract_strided_slice %15 {offsets = [0, 0], sizes = [88, 256], strides = [1, 1]} : vector<96x256xf32> to vector<88x256xf32>
    %20 = vector.extract_strided_slice %18 {offsets = [0, 0], sizes = [88, 256], strides = [1, 1]} : vector<96x256xf32> to vector<88x256xf32>
    %21 = vector.extract_strided_slice %15 {offsets = [8, 0], sizes = [88, 256], strides = [1, 1]} : vector<96x256xf32> to vector<88x256xf32>
    %22 = vector.extract_strided_slice %18 {offsets = [8, 0], sizes = [88, 256], strides = [1, 1]} : vector<96x256xf32> to vector<88x256xf32>
    %23 = tpu.concatenate %19, %20, %21, %22 in 1 : vector<88x256xf32>, vector<88x256xf32>, vector<88x256xf32>, vector<88x256xf32> -> vector<88x1024xf32>
    %c0_9 = arith.constant 0 : index
    %c0_10 = arith.constant 0 : index
    %24 = vector.load %arg5[%c0_9, %c0_10] : memref<1024x128xf32, #tpu.memory_space<vmem>>, vector<1024x128xf32>
    %cst_11 = arith.constant dense<0.000000e+00> : vector<88x128xf32>
    %25 = tpu.matmul %23, %24, %cst_11 {dimension_numbers = #tpu.dot_dimension_numbers<[1], [0], [0], [1], [0, 0, 1, 1], [], []>} : vector<88x1024xf32>, vector<1024x128xf32>, vector<88x128xf32> -> vector<88x128xf32>
    %c0_12 = arith.constant 0 : index
    %c0_13 = arith.constant 0 : index
    %26 = vector.load %arg6[%c0_12, %c0_13] : memref<1x128xf32, #tpu.memory_space<vmem>>, vector<1x128xf32>
    %27 = vector.broadcast %26 : vector<1x128xf32> to vector<88x128xf32>
    %28 = arith.addf %25, %27 : vector<88x128xf32>
    %cst_14 = arith.constant 0.00999999977 : f32
    %29 = vector.broadcast %cst_14 : f32 to vector<88x128xf32>
    %30 = arith.mulf %29, %28 : vector<88x128xf32>
    %31 = arith.maximumf %28, %30 : vector<88x128xf32>
    %c0_15 = arith.constant 0 : index
    %c0_16 = arith.constant 0 : index
    %32 = vector.load %arg7[%c0_15, %c0_16] : memref<1x128xf32, #tpu.memory_space<vmem>>, vector<1x128xf32>
    %33 = vector.broadcast %32 : vector<1x128xf32> to vector<88x128xf32>
    %34 = arith.mulf %31, %33 : vector<88x128xf32>
    %c0_17 = arith.constant 0 : index
    %c0_18 = arith.constant 0 : index
    %35 = vector.load %arg8[%c0_17, %c0_18] : memref<1x128xf32, #tpu.memory_space<vmem>>, vector<1x128xf32>
    %36 = vector.broadcast %35 : vector<1x128xf32> to vector<88x128xf32>
    %37 = arith.addf %34, %36 : vector<88x128xf32>
    %38 = vector.extract_strided_slice %37 {offsets = [0, 0], sizes = [8, 128], strides = [1, 1]} : vector<88x128xf32> to vector<8x128xf32>
    %39 = vector.extract_strided_slice %37 {offsets = [8, 0], sizes = [8, 128], strides = [1, 1]} : vector<88x128xf32> to vector<8x128xf32>
    %40 = arith.maximumf %38, %39 : vector<8x128xf32>
    %41 = vector.extract_strided_slice %37 {offsets = [16, 0], sizes = [8, 128], strides = [1, 1]} : vector<88x128xf32> to vector<8x128xf32>
    %42 = arith.maximumf %40, %41 : vector<8x128xf32>
    %c0_19 = arith.constant 0 : index
    %c0_20 = arith.constant 0 : index
    %c0_21 = arith.constant 0 : index
    %43 = vector.load %arg9[%c0_19, %c0_20, %c0_21] : memref<1x40x128xf32, #tpu.memory_space<vmem>>, vector<1x8x128xf32>
    %44 = vector.shape_cast %43 : vector<1x8x128xf32> to vector<8x128xf32>
    %45 = vector.shape_cast %42 : vector<8x128xf32> to vector<1x8x128xf32>
    tpu.vector_store %arg9[%c0_19, %c0_20, %c0_21], %45 {strides = array<i32>} : memref<1x40x128xf32, #tpu.memory_space<vmem>>, vector<1x8x128xf32>,
    %46 = vector.extract_strided_slice %37 {offsets = [16, 0], sizes = [8, 128], strides = [1, 1]} : vector<88x128xf32> to vector<8x128xf32>
    %47 = vector.extract_strided_slice %37 {offsets = [24, 0], sizes = [8, 128], strides = [1, 1]} : vector<88x128xf32> to vector<8x128xf32>
    %48 = arith.maximumf %46, %47 : vector<8x128xf32>
    %49 = vector.extract_strided_slice %37 {offsets = [32, 0], sizes = [8, 128], strides = [1, 1]} : vector<88x128xf32> to vector<8x128xf32>
    %50 = arith.maximumf %48, %49 : vector<8x128xf32>
    %c0_22 = arith.constant 0 : index
    %c8 = arith.constant 8 : index
    %c0_23 = arith.constant 0 : index
    %51 = vector.load %arg9[%c0_22, %c8, %c0_23] : memref<1x40x128xf32, #tpu.memory_space<vmem>>, vector<1x8x128xf32>
    %52 = vector.shape_cast %51 : vector<1x8x128xf32> to vector<8x128xf32>
    %53 = vector.shape_cast %50 : vector<8x128xf32> to vector<1x8x128xf32>
    tpu.vector_store %arg9[%c0_22, %c8, %c0_23], %53 {strides = array<i32>} : memref<1x40x128xf32, #tpu.memory_space<vmem>>, vector<1x8x128xf32>,
    %54 = vector.extract_strided_slice %37 {offsets = [32, 0], sizes = [8, 128], strides = [1, 1]} : vector<88x128xf32> to vector<8x128xf32>
    %55 = vector.extract_strided_slice %37 {offsets = [40, 0], sizes = [8, 128], strides = [1, 1]} : vector<88x128xf32> to vector<8x128xf32>
    %56 = arith.maximumf %54, %55 : vector<8x128xf32>
    %57 = vector.extract_strided_slice %37 {offsets = [48, 0], sizes = [8, 128], strides = [1, 1]} : vector<88x128xf32> to vector<8x128xf32>
    %58 = arith.maximumf %56, %57 : vector<8x128xf32>
    %c0_24 = arith.constant 0 : index
    %c16 = arith.constant 16 : index
    %c0_25 = arith.constant 0 : index
    %59 = vector.load %arg9[%c0_24, %c16, %c0_25] : memref<1x40x128xf32, #tpu.memory_space<vmem>>, vector<1x8x128xf32>
    %60 = vector.shape_cast %59 : vector<1x8x128xf32> to vector<8x128xf32>
    %61 = vector.shape_cast %58 : vector<8x128xf32> to vector<1x8x128xf32>
    tpu.vector_store %arg9[%c0_24, %c16, %c0_25], %61 {strides = array<i32>} : memref<1x40x128xf32, #tpu.memory_space<vmem>>, vector<1x8x128xf32>,
    %62 = vector.extract_strided_slice %37 {offsets = [48, 0], sizes = [8, 128], strides = [1, 1]} : vector<88x128xf32> to vector<8x128xf32>
    %63 = vector.extract_strided_slice %37 {offsets = [56, 0], sizes = [8, 128], strides = [1, 1]} : vector<88x128xf32> to vector<8x128xf32>
    %64 = arith.maximumf %62, %63 : vector<8x128xf32>
    %65 = vector.extract_strided_slice %37 {offsets = [64, 0], sizes = [8, 128], strides = [1, 1]} : vector<88x128xf32> to vector<8x128xf32>
    %66 = arith.maximumf %64, %65 : vector<8x128xf32>
    %c0_26 = arith.constant 0 : index
    %c24 = arith.constant 24 : index
    %c0_27 = arith.constant 0 : index
    %67 = vector.load %arg9[%c0_26, %c24, %c0_27] : memref<1x40x128xf32, #tpu.memory_space<vmem>>, vector<1x8x128xf32>
    %68 = vector.shape_cast %67 : vector<1x8x128xf32> to vector<8x128xf32>
    %69 = vector.shape_cast %66 : vector<8x128xf32> to vector<1x8x128xf32>
    tpu.vector_store %arg9[%c0_26, %c24, %c0_27], %69 {strides = array<i32>} : memref<1x40x128xf32, #tpu.memory_space<vmem>>, vector<1x8x128xf32>,
    %70 = vector.extract_strided_slice %37 {offsets = [64, 0], sizes = [8, 128], strides = [1, 1]} : vector<88x128xf32> to vector<8x128xf32>
    %71 = vector.extract_strided_slice %37 {offsets = [72, 0], sizes = [8, 128], strides = [1, 1]} : vector<88x128xf32> to vector<8x128xf32>
    %72 = arith.maximumf %70, %71 : vector<8x128xf32>
    %73 = vector.extract_strided_slice %37 {offsets = [80, 0], sizes = [8, 128], strides = [1, 1]} : vector<88x128xf32> to vector<8x128xf32>
    %74 = arith.maximumf %72, %73 : vector<8x128xf32>
    %c0_28 = arith.constant 0 : index
    %c32 = arith.constant 32 : index
    %c0_29 = arith.constant 0 : index
    %75 = vector.load %arg9[%c0_28, %c32, %c0_29] : memref<1x40x128xf32, #tpu.memory_space<vmem>>, vector<1x8x128xf32>
    %76 = vector.shape_cast %75 : vector<1x8x128xf32> to vector<8x128xf32>
    %77 = vector.shape_cast %74 : vector<8x128xf32> to vector<1x8x128xf32>
    tpu.vector_store %arg9[%c0_28, %c32, %c0_29], %77 {strides = array<i32>} : memref<1x40x128xf32, #tpu.memory_space<vmem>>, vector<1x8x128xf32>,
    return
  }
  func.func @transform_0(%arg0: i32) -> (i32, i32, i32) {
    %c0_i32 = arith.constant 0 : i32
    %c0_i32_0 = arith.constant 0 : i32
    %c0_i32_1 = arith.constant 0 : i32
    return %arg0, %c0_i32, %c0_i32_0 : i32, i32, i32
  }
  func.func @transform_1(%arg0: i32) -> (i32, i32) {
    %c0_i32 = arith.constant 0 : i32
    %c0_i32_0 = arith.constant 0 : i32
    %c0_i32_1 = arith.constant 0 : i32
    return %c0_i32, %c0_i32_0 : i32, i32
  }
  func.func @transform_2(%arg0: i32) -> (i32, i32) {
    %c0_i32 = arith.constant 0 : i32
    %c0_i32_0 = arith.constant 0 : i32
    %c0_i32_1 = arith.constant 0 : i32
    return %c0_i32, %c0_i32_0 : i32, i32
  }
  func.func @transform_3(%arg0: i32) -> (i32, i32) {
    %c0_i32 = arith.constant 0 : i32
    %c0_i32_0 = arith.constant 0 : i32
    %c0_i32_1 = arith.constant 0 : i32
    return %c0_i32, %c0_i32_0 : i32, i32
  }
  func.func @transform_4(%arg0: i32) -> (i32, i32) {
    %c0_i32 = arith.constant 0 : i32
    %c0_i32_0 = arith.constant 0 : i32
    %c0_i32_1 = arith.constant 0 : i32
    return %c0_i32, %c0_i32_0 : i32, i32
  }
  func.func @transform_5(%arg0: i32) -> (i32, i32) {
    %c0_i32 = arith.constant 0 : i32
    %c0_i32_0 = arith.constant 0 : i32
    %c0_i32_1 = arith.constant 0 : i32
    return %c0_i32, %c0_i32_0 : i32, i32
  }
  func.func @transform_6(%arg0: i32) -> (i32, i32) {
    %c0_i32 = arith.constant 0 : i32
    %c0_i32_0 = arith.constant 0 : i32
    %c0_i32_1 = arith.constant 0 : i32
    return %c0_i32, %c0_i32_0 : i32, i32
  }
  func.func @transform_7(%arg0: i32) -> (i32, i32) {
    %c0_i32 = arith.constant 0 : i32
    %c0_i32_0 = arith.constant 0 : i32
    %c0_i32_1 = arith.constant 0 : i32
    return %c0_i32, %c0_i32_0 : i32, i32
  }
  func.func @transform_8(%arg0: i32) -> (i32, i32, i32) {
    %c0_i32 = arith.constant 0 : i32
    %c0_i32_0 = arith.constant 0 : i32
    %c0_i32_1 = arith.constant 0 : i32
    return %arg0, %c0_i32, %c0_i32_0 : i32, i32, i32
  }
}

</mosaic_0001>

<bundles_post_ra>
// kernel: cnn_forward.1
= control target key start
LH: loop header
LB: loop body
LE: loop exit
PB: predicated region body
PF: predicated region fallthrough
CT: control target
= control target key end

     0   :  { %v2187_v3 = vmov 0.0   ;;  %vm81_vm0 = vcmask 130048   ;;  %s3852_s1 = inlined_call_operand.vmem [shape: f32[16,256], index: 1, kind: input, shape index: {}]   ;;  %s3853_s0 = inlined_call_operand.vmem [shape: f32[1,384,16], index: 0, kind: input, shape index: {}]   ;;  %s3854_s4 = inlined_call_operand.vmem [shape: f32[1024,128], index: 4, kind: input, shape index: {}]   ;;  %s3855_s2 = inlined_call_operand.vmem [shape: f32[1,256], index: 2, kind: input, shape index: {}]   ;;  %s3856_s3 = inlined_call_operand.vmem [shape: f32[1,256], index: 3, kind: input, shape index: {}]   ;;  %s3857_s5 = inlined_call_operand.vmem [shape: f32[1,128], index: 5, kind: input, shape index: {}]   ;;  %s3858_s6 = inlined_call_operand.vmem [shape: f32[1,128], index: 6, kind: input, shape index: {}]   ;;  %s3859_s7 = inlined_call_operand.vmem [shape: f32[1,128], index: 7, kind: input, shape index: {}]   ;;  %s3860_s8 = inlined_call_operand.vmem [shape: f32[1,40,128], index: 8, kind: output, shape index: {}]  }
   0x1   :  { %v78_v0 = vld [vmem:[%s3852_s1 + $0x8] sm:$0xff]  ;;  %v80_v1 = vld [vmem:[%s3852_s1 + $0x18] sm:$0xff]  ;;  %v77_v2 = vld [vmem:[%s3852_s1] sm:$0xff]  ;;  %290 = vmatprep.mubr.f32.mxu0 %v2187_v3 }
   0x2   :  { %v2038_v4 = vpack.c.bf16 %v80_v1, %v78_v0  ;;  %v79_v5 = vld [vmem:[%s3852_s1 + $0x10] sm:$0xff]  ;;  %v29_v7 = vld [vmem:[%s3853_s0] sm:$0xff]  ;;  %v30_v8 = vld [vmem:[%s3853_s0 + $0x8] sm:$0xff] }
   0x3   :  { %v2040_v6 = vpack.c.bf16 %v79_v5, %v77_v2  ;;  %v31_v9 = vld [vmem:[%s3853_s0 + $0x10] sm:$0xff]  ;;  %v32_v10 = vld [vmem:[%s3853_s0 + $0x18] sm:$0xff]  ;;  %v33_v11 = vld [vmem:[%s3853_s0 + $0x20] sm:$0xff] }
   0x4   :  { %2039 = vmatprep.subr.bf16.mxu0 %v2038_v4  ;;  %v34_v12 = vld [vmem:[%s3853_s0 + $0x28] sm:$0xff]  ;;  %v35_v13 = vld [vmem:[%s3853_s0 + $0x30] sm:$0xff]  ;;  %v36_v14 = vld [vmem:[%s3853_s0 + $0x38] sm:$0xff] }
   0x5   :  { %2041 = vmatpush1.bf16.msra.mxu0 %v2040_v6  ;;  %v37_v15 = vld [vmem:[%s3853_s0 + $0x40] sm:$0xff]  ;;  %v38_v16 = vld [vmem:[%s3853_s0 + $0x48] sm:$0xff]  ;;  %v39_v17 = vld [vmem:[%s3853_s0 + $0x50] sm:$0xff] }
   0x6   :  { %v40_v18 = vld [vmem:[%s3853_s0 + $0x58] sm:$0xff]  ;;  %v41_v19 = vld [vmem:[%s3853_s0 + $0x60] sm:$0xff]  ;;  %v42_v20 = vld [vmem:[%s3853_s0 + $0x68] sm:$0xff] }
   0x7   :  { %v43_v21 = vld [vmem:[%s3853_s0 + $0x70] sm:$0xff]  ;;  %v44_v22 = vld [vmem:[%s3853_s0 + $0x78] sm:$0xff]  ;;  %v45_v23 = vld [vmem:[%s3853_s0 + $0x80] sm:$0xff] }
   0x8   :  { %1727 = vmatmul.mubr.msk.f32.vlgmr.msra.gmra.mrb[0].mxu0 %vm81_vm0, %v29_v7  ;;  %v46_v24 = vld [vmem:[%s3853_s0 + $0x88] sm:$0xff]  ;;  %v47_v25 = vld [vmem:[%s3853_s0 + $0x90] sm:$0xff]  ;;  %v48_v26 = vld [vmem:[%s3853_s0 + $0x98] sm:$0xff] }
   0x9   :  { %296 = vmatprep.mubr.f32.mxu0 %v2187_v3  ;;  %v49_v27 = vld [vmem:[%s3853_s0 + $0xa0] sm:$0xff]  ;;  %v50_v28 = vld [vmem:[%s3853_s0 + $0xa8] sm:$0xff]  ;;  %v51_v29 = vld [vmem:[%s3853_s0 + $0xb0] sm:$0xff] }
   0xa   :  { %v52_v30 = vld [vmem:[%s3853_s0 + $0xb8] sm:$0xff]  ;;  %v53_v31 = vld [vmem:[%s3853_s0 + $0xc0] sm:$0xff]  ;;  %v54_v32 = vld [vmem:[%s3853_s0 + $0xc8] sm:$0xff] }
   0xb   :  { %v55_v33 = vld [vmem:[%s3853_s0 + $0xd0] sm:$0xff]  ;;  %v56_v34 = vld [vmem:[%s3853_s0 + $0xd8] sm:$0xff]  ;;  %v57_v35 = vld [vmem:[%s3853_s0 + $0xe0] sm:$0xff] }
   0xc   :  { %1728 = vmatmul.mubr.msk.f32.gmra.mrb[2].mxu0 %vm81_vm0, %v30_v8  ;;  %v1051_v36 = vld [vmem:[%s3854_s4 + $0x80] sm:$0xff]  ;;  %v1052_v37 = vld [vmem:[%s3854_s4 + $0x88] sm:$0xff]  ;;  %v1053_v43 = vld [vmem:[%s3854_s4 + $0x90] sm:$0xff] }
   0xd   :  { %302 = vmatprep.mubr.f32.mxu0 %v2187_v3  ;;  %v2042_v38 = vpack.c.bf16 %v1052_v37, %v1051_v36  ;;  %v1035_v39 = vld [vmem:[%s3854_s4] sm:$0xff]  ;;  %v1036_v40 = vld [vmem:[%s3854_s4 + $0x8] sm:$0xff]  ;;  %v1054_v44 = vld [vmem:[%s3854_s4 + $0x98] sm:$0xff] }
   0xe   :  { %v2044_v41 = vpack.c.bf16 %v1036_v40, %v1035_v39  ;;  %v58_v42 = vld [vmem:[%s3853_s0 + $0xe8] sm:$0xff]  ;;  %v2046_v45 = vpack.c.bf16 %v1054_v44, %v1053_v43  ;;  %v1037_v46 = vld [vmem:[%s3854_s4 + $0x10] sm:$0xff]  ;;  %v1038_v47 = vld [vmem:[%s3854_s4 + $0x18] sm:$0xff] }
   0xf   :  { %2043 = vmatprep.subr.bf16.mxu0 %v2042_v38  ;;  %2170 = vmatprep.subr.bf16.mxu1 %v2042_v38  ;;  %v2048_v48 = vpack.c.bf16 %v1038_v47, %v1037_v46  ;;  %v59_v49 = vld [vmem:[%s3853_s0 + $0xf0] sm:$0xff]  ;;  %v1055_v50 = vld [vmem:[%s3854_s4 + $0xa0] sm:$0xff]  ;;  %v1056_v51 = vld [vmem:[%s3854_s4 + $0xa8] sm:$0xff] }
  0x10   :  { %1729 = vmatmul.mubr.msk.f32.gmra.mrb[4].mxu0 %vm81_vm0, %v31_v9  ;;  %2178 = vmatpush3.bf16.msra.mxu1 %v2044_v41  ;;  %v2050_v52 = vpack.c.bf16 %v1056_v51, %v1055_v50  ;;  %v1039_v53 = vld [vmem:[%s3854_s4 + $0x20] sm:$0xff]  ;;  %v1040_v54 = vld [vmem:[%s3854_s4 + $0x28] sm:$0xff]  ;;  %v60_v56 = vld [vmem:[%s3853_s0 + $0xf8] sm:$0xff] }
  0x11   :  { %308 = vmatprep.mubr.f32.mxu0 %v2187_v3  ;;  %2045 = vmatpush3.bf16.msra.mxu0 %v2044_v41  ;;  %v2052_v55 = vpack.c.bf16 %v1040_v54, %v1039_v53  ;;  %v1057_v57 = vld [vmem:[%s3854_s4 + $0xb0] sm:$0xff]  ;;  %v1058_v58 = vld [vmem:[%s3854_s4 + $0xb8] sm:$0xff]  ;;  %v61_v63 = vld [vmem:[%s3853_s0 + $0x100] sm:$0xff] }
  0x12   :  { %2047 = vmatprep.subr.bf16.mxu0 %v2046_v45  ;;  %2171 = vmatprep.subr.bf16.mxu1 %v2046_v45  ;;  %v2054_v59 = vpack.c.bf16 %v1058_v58, %v1057_v57  ;;  %v1041_v60 = vld [vmem:[%s3854_s4 + $0x30] sm:$0xff]  ;;  %v1042_v61 = vld [vmem:[%s3854_s4 + $0x38] sm:$0xff]  ;;  %v1059_v0 = vld [vmem:[%s3854_s4 + $0xc0] sm:$0xff] }
  0x13   :  { %v2056_v62 = vpack.c.bf16 %v1042_v61, %v1041_v60  ;;  %v1060_v1 = vld [vmem:[%s3854_s4 + $0xc8] sm:$0xff]  ;;  %v1043_v4 = vld [vmem:[%s3854_s4 + $0x40] sm:$0xff]  ;;  %v1061_v8 = vld [vmem:[%s3854_s4 + $0xd0] sm:$0xff] }
  0x14   :  { %1730 = vmatmul.mubr.msk.f32.gmra.mrb[6].mxu0 %vm81_vm0, %v32_v10  ;;  %2179 = vmatpush3.bf16.msra.mxu1 %v2048_v48  ;;  %v2058_v2 = vpack.c.bf16 %v1060_v1, %v1059_v0  ;;  %v1044_v5 = vld [vmem:[%s3854_s4 + $0x48] sm:$0xff]  ;;  %v1062_v9 = vld [vmem:[%s3854_s4 + $0xd8] sm:$0xff]  ;;  %v73_v36 = vld [vmem:[%s3853_s0 + $0x160] sm:$0xff] }
  0x15   :  { %314 = vmatprep.mubr.f32.mxu0 %v2187_v3  ;;  %2049 = vmatpush3.bf16.msra.mxu0 %v2048_v48  ;;  %v2060_v6 = vpack.c.bf16 %v1044_v5, %v1043_v4  ;;  %v62_v7 = vld [vmem:[%s3853_s0 + $0x108] sm:$0xff]  ;;  %v2062_v10 = vpack.c.bf16 %v1062_v9, %v1061_v8  ;;  %v75_v38 = vld [vmem:[%s3853_s0 + $0x170] sm:$0xff]  ;;  %v76_v39 = vld [vmem:[%s3853_s0 + $0x178] sm:$0xff] }
  0x16   :  { %2051 = vmatprep.subr.bf16.mxu0 %v2050_v52  ;;  %2172 = vmatprep.subr.bf16.mxu1 %v2050_v52  ;;  %v74_v37 = vld [vmem:[%s3853_s0 + $0x168] sm:$0xff]  ;;  %v1083_v40 = vld [vmem:[%s3854_s4 + $0x180] sm:$0xff] }
  0x17   :  { %v1084_v41 = vld [vmem:[%s3854_s4 + $0x188] sm:$0xff]  ;;  %v771_v0 = vld [vmem:[%s3855_s2] sm:$0x3] }
  0x18   :  { %1731 = vmatmul.mubr.msk.f32.gmra.mrb[8].mxu0 %vm81_vm0, %v33_v11  ;;  %2180 = vmatpush3.bf16.msra.mxu1 %v2052_v55  ;;  %v1045_v11 = vld [vmem:[%s3854_s4 + $0x50] sm:$0xff] }
  0x19   :  { %320 = vmatprep.mubr.f32.mxu0 %v2187_v3  ;;  %2053 = vmatpush3.bf16.msra.mxu0 %v2052_v55 }
  0x1a   :  { %2055 = vmatprep.subr.bf16.mxu0 %v2054_v59  ;;  %2173 = vmatprep.subr.bf16.mxu1 %v2054_v59 }
  0x1c   :  { %1732 = vmatmul.mubr.msk.f32.gmra.mrb[10].mxu0 %vm81_vm0, %v34_v12  ;;  %2181 = vmatpush3.bf16.msra.mxu1 %v2056_v62  ;;  %v1046_v12 = vld [vmem:[%s3854_s4 + $0x58] sm:$0xff] }
  0x1d   :  { %326 = vmatprep.mubr.f32.mxu0 %v2187_v3  ;;  %2057 = vmatpush3.bf16.msra.mxu0 %v2056_v62 }
  0x1e   :  { %2059 = vmatprep.subr.bf16.mxu0 %v2058_v2  ;;  %2174 = vmatprep.subr.bf16.mxu1 %v2058_v2 }
  0x20   :  { %1733 = vmatmul.mubr.msk.f32.gmra.mrb[12].mxu0 %vm81_vm0, %v35_v13  ;;  %2182 = vmatpush3.bf16.msra.mxu1 %v2060_v6  ;;  %v2064_v13 = vpack.c.bf16 %v1046_v12, %v1045_v11  ;;  %v879_v11 = vld [vmem:[%s3856_s3] sm:$0x3] }
  0x21   :  { %332 = vmatprep.mubr.f32.mxu0 %v2187_v3  ;;  %2061 = vmatpush3.bf16.msra.mxu0 %v2060_v6 }
  0x22   :  { %2063 = vmatprep.subr.bf16.mxu0 %v2062_v10  ;;  %2175 = vmatprep.subr.bf16.mxu1 %v2062_v10 }
  0x24   :  { %1734 = vmatmul.mubr.msk.f32.gmra.mrb[14].mxu0 %vm81_vm0, %v36_v14  ;;  %v63_v14 = vld [vmem:[%s3853_s0 + $0x110] sm:$0xff]  ;;  %2183 = vmatpush3.bf16.msra.mxu1 %v2064_v13 }
  0x25   :  { %338 = vmatprep.mubr.f32.mxu0 %v2187_v3  ;;  %2065 = vmatpush3.bf16.msra.mxu0 %v2064_v13 }
  0x28   :  { %1735 = vmatmul.mubr.msk.f32.gmra.mrb[16].mxu0 %vm81_vm0, %v37_v15  ;;  %v1063_v15 = vld [vmem:[%s3854_s4 + $0xe0] sm:$0xff] }
  0x29   :  { %344 = vmatprep.mubr.f32.mxu0 %v2187_v3 }
  0x2c   :  { %1736 = vmatmul.mubr.msk.f32.gmra.mrb[18].mxu0 %vm81_vm0, %v38_v16  ;;  %v1064_v16 = vld [vmem:[%s3854_s4 + $0xe8] sm:$0xff] }
  0x2d   :  { %350 = vmatprep.mubr.f32.mxu0 %v2187_v3 }
  0x30   :  { %1737 = vmatmul.mubr.msk.f32.gmra.mrb[20].mxu0 %vm81_vm0, %v39_v17  ;;  %v2066_v17 = vpack.c.bf16 %v1064_v16, %v1063_v15 }
  0x31   :  { %356 = vmatprep.mubr.f32.mxu0 %v2187_v3 }
  0x32   :  { %2067 = vmatprep.subr.bf16.mxu0 %v2066_v17  ;;  %2176 = vmatprep.subr.bf16.mxu1 %v2066_v17 }
  0x34   :  { %1738 = vmatmul.mubr.msk.f32.gmra.mrb[22].mxu0 %vm81_vm0, %v40_v18  ;;  %v1047_v18 = vld [vmem:[%s3854_s4 + $0x60] sm:$0xff] }
  0x35   :  { %362 = vmatprep.mubr.f32.mxu0 %v2187_v3 }
  0x38   :  { %1739 = vmatmul.mubr.msk.f32.gmra.mrb[24].mxu0 %vm81_vm0, %v41_v19  ;;  %v1048_v19 = vld [vmem:[%s3854_s4 + $0x68] sm:$0xff] }
  0x39   :  { %368 = vmatprep.mubr.f32.mxu0 %v2187_v3 }
  0x3c   :  { %1740 = vmatmul.mubr.msk.f32.gmra.mrb[26].mxu0 %vm81_vm0, %v42_v20  ;;  %v2068_v20 = vpack.c.bf16 %v1048_v19, %v1047_v18  ;;  %v2642_v19 = vld [vmem:[%s3854_s4 + $0x100] sm:$0xff] }
  0x3d   :  { %374 = vmatprep.mubr.f32.mxu0 %v2187_v3 }
  0x3e   :  { %2069 = vmatpush3.bf16.msra.mxu0 %v2068_v20  ;;  %2184 = vmatpush3.bf16.msra.mxu1 %v2068_v20  ;;  %v2647_v20 = vld [vmem:[%s3854_s4 + $0x108] sm:$0xff] }
  0x40   :  { %1741 = vmatmul.mubr.msk.f32.gmra.mrb[28].mxu0 %vm81_vm0, %v43_v21  ;;  %v64_v21 = vld [vmem:[%s3853_s0 + $0x118] sm:$0xff] }
  0x41   :  { %380 = vmatprep.mubr.f32.mxu0 %v2187_v3 }
  0x44   :  { %1742 = vmatmul.mubr.msk.f32.gmra.mrb[30].mxu0 %vm81_vm0, %v44_v22  ;;  %v1065_v22 = vld [vmem:[%s3854_s4 + $0xf0] sm:$0xff] }
  0x45   :  { %386 = vmatprep.mubr.f32.mxu0 %v2187_v3 }
  0x48   :  { %1743 = vmatmul.mubr.msk.f32.gmra.mrb[32].mxu0 %vm81_vm0, %v45_v23  ;;  %v1066_v23 = vld [vmem:[%s3854_s4 + $0xf8] sm:$0xff] }
  0x49   :  { %392 = vmatprep.mubr.f32.mxu0 %v2187_v3 }
  0x4c   :  { %1744 = vmatmul.mubr.msk.f32.gmra.mrb[34].mxu0 %vm81_vm0, %v46_v24  ;;  %v2070_v24 = vpack.c.bf16 %v1066_v23, %v1065_v22  ;;  %v2653_v22 = vld [vmem:[%s3854_s4 + $0x190] sm:$0xff]  ;;  %v2658_v23 = vld [vmem:[%s3854_s4 + $0x198] sm:$0xff] }
  0x4d   :  { %398 = vmatprep.mubr.f32.mxu0 %v2187_v3 }
  0x4e   :  { %2071 = vmatprep.subr.bf16.mxu0 %v2070_v24  ;;  %2177 = vmatprep.subr.bf16.mxu1 %v2070_v24  ;;  %v2663_v24 = vld [vmem:[%s3854_s4 + $0x110] sm:$0xff] }
  0x50   :  { %1745 = vmatmul.mubr.msk.f32.gmra.mrb[36].mxu0 %vm81_vm0, %v47_v25  ;;  %v1049_v25 = vld [vmem:[%s3854_s4 + $0x70] sm:$0xff] }
  0x51   :  { %404 = vmatprep.mubr.f32.mxu0 %v2187_v3 }
  0x54   :  { %1746 = vmatmul.mubr.msk.f32.gmra.mrb[38].mxu0 %vm81_vm0, %v48_v26  ;;  %v1050_v26 = vld [vmem:[%s3854_s4 + $0x78] sm:$0xff] }
  0x55   :  { %410 = vmatprep.mubr.f32.mxu0 %v2187_v3 }
  0x58   :  { %1747 = vmatmul.mubr.msk.f32.gmra.mrb[40].mxu0 %vm81_vm0, %v49_v27  ;;  %v2072_v27 = vpack.c.bf16 %v1050_v26, %v1049_v25 }
  0x59   :  { %416 = vmatprep.mubr.f32.mxu0 %v2187_v3 }
  0x5a   :  { %2073 = vmatpush3.bf16.msra.mxu0 %v2072_v27  ;;  %2185 = vmatpush3.bf16.msra.mxu1 %v2072_v27 }
  0x5c   :  { %1748 = vmatmul.mubr.msk.f32.gmra.mrb[42].mxu0 %vm81_vm0, %v50_v28  ;;  %v65_v28 = vld [vmem:[%s3853_s0 + $0x120] sm:$0xff] }
  0x5d   :  { %422 = vmatprep.mubr.f32.mxu0 %v2187_v3 }
  0x60   :  { %1749 = vmatmul.mubr.msk.f32.gmra.mrb[44].mxu0 %vm81_vm0, %v51_v29  ;;  %v66_v29 = vld [vmem:[%s3853_s0 + $0x128] sm:$0xff] }
  0x61   :  { %428 = vmatprep.mubr.f32.mxu0 %v2187_v3 }
  0x64   :  { %1750 = vmatmul.mubr.msk.f32.gmra.mrb[46].mxu0 %vm81_vm0, %v52_v30  ;;  %v67_v30 = vld [vmem:[%s3853_s0 + $0x130] sm:$0xff] }
  0x65   :  { %434 = vmatprep.mubr.f32.mxu0 %v2187_v3 }
  0x68   :  { %1751 = vmatmul.mubr.msk.f32.gmra.mrb[48].mxu0 %vm81_vm0, %v53_v31  ;;  %v68_v31 = vld [vmem:[%s3853_s0 + $0x138] sm:$0xff] }
  0x69   :  { %440 = vmatprep.mubr.f32.mxu0 %v2187_v3 }
  0x6c   :  { %1752 = vmatmul.mubr.msk.f32.gmra.mrb[50].mxu0 %vm81_vm0, %v54_v32  ;;  %v69_v32 = vld [vmem:[%s3853_s0 + $0x140] sm:$0xff] }
  0x6d   :  { %446 = vmatprep.mubr.f32.mxu0 %v2187_v3 }
  0x70   :  { %1753 = vmatmul.mubr.msk.f32.gmra.mrb[52].mxu0 %vm81_vm0, %v55_v33  ;;  %v70_v33 = vld [vmem:[%s3853_s0 + $0x148] sm:$0xff] }
  0x71   :  { %452 = vmatprep.mubr.f32.mxu0 %v2187_v3 }
  0x74   :  { %1754 = vmatmul.mubr.msk.f32.gmra.mrb[54].mxu0 %vm81_vm0, %v56_v34  ;;  %v71_v34 = vld [vmem:[%s3853_s0 + $0x150] sm:$0xff] }
  0x75   :  { %458 = vmatprep.mubr.f32.mxu0 %v2187_v3 }
  0x78   :  { %1755 = vmatmul.mubr.msk.f32.gmra.mrb[56].mxu0 %vm81_vm0, %v57_v35  ;;  %v72_v35 = vld [vmem:[%s3853_s0 + $0x158] sm:$0xff] }
  0x79   :  { %464 = vmatprep.mubr.f32.mxu0 %v2187_v3 }
  0x7c   :  { %1756 = vmatmul.mubr.msk.f32.gmra.mrb[58].mxu0 %vm81_vm0, %v58_v42  ;;  %v2074_v42 = vpack.c.bf16 %v1084_v41, %v1083_v40 }
  0x7d   :  { %470 = vmatprep.mubr.f32.mxu0 %v2187_v3 }
  0x7e   :  { %2075 = vmatprep.subr.bf16.mxu1 %v2074_v42 }
  0x80   :  { %1757 = vmatmul.mubr.msk.f32.gmra.mrb[60].mxu0 %vm81_vm0, %v59_v49 }
  0x81   :  { %476 = vmatprep.mubr.f32.mxu0 %v2187_v3 }
  0x84   :  { %1758 = vmatmul.mubr.msk.f32.gmra.mrb[62].mxu0 %vm81_vm0, %v60_v56  ;;  %v773_v56 = vlaneseq }
  0x85   :  { %482 = vmatprep.mubr.f32.mxu0 %v2187_v3 }
  0x86   :  { %v774_v59 = vshrl.u32 %v773_v56, 7  ;;  %v2733_v56 = vld [vmem:[%s3854_s4 + $0x138] sm:$0xff] }
  0x88   :  { %1759 = vmatmul.mubr.msk.f32.gmra.mrb[64].mxu0 %vm81_vm0, %v61_v63  ;;  %v775_v63 = vsub.s32 0, %v774_v59  ;;  %v779_v2 = vsub.s32 1, %v774_v59 }
  0x89   :  { %488 = vmatprep.mubr.f32.mxu0 %v2187_v3 }
  0x8a   :  { %v2625_v9 = vrot.slane %v771_v0, %v775_v63  ;;  %v2631_v13 = vrot.slane %v771_v0, %v779_v2  ;;  %v2666_v26 = vrot.slane %v879_v11, %v775_v63 }
  0x8c   :  { %1760 = vmatmul.mubr.msk.f32.gmra.mrb[66].mxu0 %vm81_vm0, %v62_v7 }
  0x8d   :  { %494 = vmatprep.mubr.f32.mxu0 %v2187_v3 }
  0x90   :  { %1761 = vmatmul.mubr.msk.f32.gmra.mrb[68].mxu0 %vm81_vm0, %v63_v14 }
  0x91   :  { %500 = vmatprep.mubr.f32.mxu0 %v2187_v3 }
  0x94   :  { %1762 = vmatmul.mubr.msk.f32.gmra.mrb[70].mxu0 %vm81_vm0, %v64_v21 }
  0x95   :  { %506 = vmatprep.mubr.f32.mxu0 %v2187_v3 }
  0x98   :  { %1763 = vmatmul.mubr.msk.f32.gmra.mrb[72].mxu0 %vm81_vm0, %v65_v28 }
  0x99   :  { %512 = vmatprep.mubr.f32.mxu0 %v2187_v3 }
  0x9c   :  { %1764 = vmatmul.mubr.msk.f32.gmra.mrb[74].mxu0 %vm81_vm0, %v66_v29  ;;  %v2673_v29 = vld [vmem:[%s3854_s4 + $0x118] sm:$0xff] }
  0x9d   :  { %518 = vmatprep.mubr.f32.mxu0 %v2187_v3 }
  0xa0   :  { %1765 = vmatmul.mubr.msk.f32.gmra.mrb[76].mxu0 %vm81_vm0, %v67_v30  ;;  %v2678_v30 = vld [vmem:[%s3854_s4 + $0x1a0] sm:$0xff] }
  0xa1   :  { %524 = vmatprep.mubr.f32.mxu0 %v2187_v3 }
  0xa4   :  { %1766 = vmatmul.mubr.msk.f32.gmra.mrb[78].mxu0 %vm81_vm0, %v68_v31  ;;  %v2683_v31 = vld [vmem:[%s3854_s4 + $0x1a8] sm:$0xff] }
  0xa5   :  { %530 = vmatprep.mubr.f32.mxu0 %v2187_v3 }
  0xa8   :  { %1767 = vmatmul.mubr.msk.f32.gmra.mrb[80].mxu0 %vm81_vm0, %v69_v32 }
  0xa9   :  { %536 = vmatprep.mubr.f32.mxu0 %v2187_v3 }
  0xac   :  { %1768 = vmatmul.mubr.msk.f32.gmra.mrb[82].mxu0 %vm81_vm0, %v70_v33  ;;  %v2686_v33 = vrot.slane %v879_v11, %v779_v2  ;;  %v2750_v2 = vld [vmem:[%s3854_s4 + $0x1c8] sm:$0xff]  ;;  %v2762_v11 = vld [vmem:[%s3854_s4 + $0x140] sm:$0xff] }
  0xad   :  { %542 = vmatprep.mubr.f32.mxu0 %v2187_v3 }
  0xb0   :  { %1769 = vmatmul.mubr.msk.f32.gmra.mrb[84].mxu0 %vm81_vm0, %v71_v34 }
  0xb1   :  { %548 = vmatprep.mubr.f32.mxu0 %v2187_v3 }
  0xb4   :  { %1770 = vmatmul.mubr.msk.f32.gmra.mrb[86].mxu0 %vm81_vm0, %v72_v35 }
  0xb5   :  { %554 = vmatprep.mubr.f32.mxu0 %v2187_v3 }
  0xb8   :  { %1771 = vmatmul.mubr.msk.f32.gmra.mrb[88].mxu0 %vm81_vm0, %v73_v36  ;;  %v2694_v36 = vld [vmem:[%s3854_s4 + $0x120] sm:$0xff] }
  0xb9   :  { %560 = vmatprep.mubr.f32.mxu0 %v2187_v3 }
  0xbc   :  { %1772 = vmatmul.mubr.msk.f32.gmra.mrb[90].mxu0 %vm81_vm0, %v74_v37  ;;  %v2699_v37 = vld [vmem:[%s3854_s4 + $0x128] sm:$0xff] }
  0xbd   :  { %566 = vmatprep.mubr.f32.mxu0 %v2187_v3 }
  0xc0   :  { %1773 = vmatmul.mubr.msk.f32.gmra.mrb[92].mxu0 %vm81_vm0, %v75_v38 }
  0xc1   :  { %572 = vmatprep.mubr.f32.mxu0 %v2187_v3 }
  0xc4   :  { %1774 = vmatmul.mubr.msk.f32.gmra.mrb[94].mxu0 %vm81_vm0, %v76_v39 }
  0xdb   :  { %v292_v43 = vpop.f32.mrb[0].mxu0 }
  0xdc   :  { %v294_v44 = vpop.f32.mrb[1].mxu0  ;;  %v579_v62 = vmul.f32 0.01, %v292_v43 }
  0xdd   :  { %v580_v1 = vmul.f32 0.01, %v294_v44 }
  0xde   :  { %v675_v8 = vmax.f32 %v292_v43, %v579_v62  ;;  %v2712_v43 = vld [vmem:[%s3854_s4 + $0x1b0] sm:$0xff] }
  0xdf   :  { %v298_v45 = vpop.f32.mrb[2].mxu0  ;;  %v676_v12 = vmax.f32 %v294_v44, %v580_v1  ;;  %v2717_v44 = vld [vmem:[%s3854_s4 + $0x1b8] sm:$0xff]  ;;  %v2745_v1 = vld [vmem:[%s3854_s4 + $0x1c0] sm:$0xff] }
  0xe0   :  { %v2587_v3 = vpop.f32.mrb[3].mxu0  ;;  %v581_v5 = vmul.f32 0.01, %v298_v45  ;;  %v783_v25 = vmul.f32 %v2625_v9, %v675_v8 }
  0xe1   :  { %v582_v7 = vmul.f32 0.01, %v2587_v3  ;;  %v784_v32 = vmul.f32 %v2631_v13, %v676_v12  ;;  %v2767_v12 = vld [vmem:[%s3854_s4 + $0x148] sm:$0xff] }
  0xe2   :  { %v677_v16 = vmax.f32 %v298_v45, %v581_v5  ;;  %v2736_v59 = vadd.f32 %v2666_v26, %v783_v25  ;;  %v2794_v25 = vld [vmem:[%s3854_s4 + $0x150] sm:$0xff] }
  0xe3   :  { %v2589_v46 = vpop.f32.mrb[4].mxu0  ;;  %v678_v21 = vmax.f32 %v2587_v3, %v582_v7  ;;  %v2753_v5 = vadd.f32 %v2686_v33, %v784_v32  ;;  %3919 = vst [vmem:[#allocation8_spill] sm:$0xff] %v2794_v25  ;;  %v2854_v25 = vld [vmem:[%s3854_s4 + $0x1f0] sm:$0xff] }
  0xe4   :  { %v2591_v47 = vpop.f32.mrb[5].mxu0  ;;  %v583_v10 = vmul.f32 0.01, %v2589_v46  ;;  %v785_v38 = vmul.f32 %v2625_v9, %v677_v16 }
  0xe5   :  { %v584_v14 = vmul.f32 0.01, %v2591_v47  ;;  %v786_v45 = vmul.f32 %v2631_v13, %v678_v21 }
  0xe6   :  { %v679_v27 = vmax.f32 %v2589_v46, %v583_v10  ;;  %v2799_v10 = vld [vmem:[%s3854_s4 + $0x158] sm:$0xff] }
  0xe7   :  { %v2593_v48 = vpop.f32.mrb[6].mxu0  ;;  %v680_v34 = vmax.f32 %v2591_v47, %v584_v14  ;;  %v2770_v14 = vadd.f32 %v2666_v26, %v785_v38  ;;  %v2787_v38 = vadd.f32 %v2686_v33, %v786_v45  ;;  %3920 = vst [vmem:[#allocation9_spill] sm:$0xff] %v2799_v10  ;;  %v2815_v47 = vld [vmem:[%s3854_s4 + $0x1e8] sm:$0xff] }
  0xe8   :  { %v2595_v49 = vpop.f32.mrb[7].mxu0  ;;  %v585_v17 = vmul.f32 0.01, %v2593_v48  ;;  %v787_v62 = vmul.f32 %v2625_v9, %v679_v27  ;;  %v2778_v27 = vld [vmem:[%s3854_s4 + $0x1d0] sm:$0xff]  ;;  %3922 = vst [vmem:[#allocation11_spill] sm:$0xff] %v2815_v47 }
  0xe9   :  { %v586_v28 = vmul.f32 0.01, %v2595_v49  ;;  %v788_v7 = vmul.f32 %v2631_v13, %v680_v34  ;;  %3917 = vst [vmem:[#allocation6_spill] sm:$0xff] %v2778_v27 }
  0xea   :  { %v681_v39 = vmax.f32 %v2593_v48, %v585_v17  ;;  %v2728_v48 = vld [vmem:[%s3854_s4 + $0x130] sm:$0xff]  ;;  %v2802_v0 = vadd.f32 %v2666_v26, %v787_v62 }
  0xeb   :  { %v2597_v50 = vpop.f32.mrb[8].mxu0  ;;  %v682_v63 = vmax.f32 %v2595_v49, %v586_v28  ;;  %v2783_v28 = vld [vmem:[%s3854_s4 + $0x1d8] sm:$0xff]  ;;  %v2818_v46 = vadd.f32 %v2686_v33, %v788_v7 }
  0xec   :  { %v2599_v51 = vpop.f32.mrb[9].mxu0  ;;  %v587_v3 = vmul.f32 0.01, %v2597_v50  ;;  %v789_v16 = vmul.f32 %v2625_v9, %v681_v39  ;;  %3918 = vst [vmem:[#allocation7_spill] sm:$0xff] %v2783_v28  ;;  %v2810_v39 = vld [vmem:[%s3854_s4 + $0x1e0] sm:$0xff] }
  0xed   :  { %v588_v49 = vmul.f32 0.01, %v2599_v51  ;;  %3921 = vst [vmem:[#allocation10_spill] sm:$0xff] %v2810_v39 }
  0xee   :  { %v683_v32 = vmax.f32 %v2597_v50, %v587_v3  ;;  %v790_v50 = vmul.f32 %v2631_v13, %v682_v63  ;;  %v2824_v3 = vadd.f32 %v2666_v26, %v789_v16  ;;  %v2836_v16 = vld [vmem:[%s3854_s4 + $0x160] sm:$0xff] }
  0xef   :  { %v2601_v52 = vpop.f32.mrb[10].mxu0  ;;  %v684_v62 = vmax.f32 %v2599_v51, %v588_v49  ;;  %3923 = vst [vmem:[#allocation12_spill] sm:$0xff] %v2836_v16 }
  0xf0   :  { %v2603_v53 = vpop.f32.mrb[11].mxu0  ;;  %v791_v7 = vmul.f32 %v2625_v9, %v683_v32  ;;  %v589_v32 = vmul.f32 0.01, %v2601_v52 }
  0xf1   :  { %v792_v49 = vmul.f32 %v2631_v13, %v684_v62 }
  0xf2   :  { %v685_v28 = vmax.f32 %v2601_v52, %v589_v32  ;;  %v2882_v52 = vld [vmem:[%s3854_s4 + $0x170] sm:$0xff] }
  0xf3   :  { %v2605_v54 = vpop.f32.mrb[12].mxu0 }
  0xf4   :  { %v2607_v55 = vpop.f32.mrb[13].mxu0 }
  0xf7   :  { %v2609_v57 = vpop.f32.mrb[14].mxu0 }
  0xf8   :  { %v2611_v58 = vpop.f32.mrb[15].mxu0 }
  0xfb   :  { %v2613_v60 = vpop.f32.mrb[16].mxu0 }
  0xfc   :  { %v2615_v61 = vpop.f32.mrb[17].mxu0 }
  0xff   :  { %v2620_v4 = vpop.f32.mrb[18].mxu0 }
 0x100   :  { %v2622_v6 = vpop.f32.mrb[19].mxu0 }
 0x103   :  { %v2634_v15 = vpop.f32.mrb[20].mxu0 }
 0x104   :  { %3913 = vst [vmem:[#allocation2_spill] sm:$0xff] %v2634_v15  ;;  %v2637_v18 = vpop.f32.mrb[21].mxu0 }
 0x105   :  { %3914 = vst [vmem:[#allocation3_spill] sm:$0xff] %v2637_v18 }
 0x107   :  { %v2689_v35 = vpop.f32.mrb[22].mxu0 }
 0x108   :  { %3915 = vst [vmem:[#allocation4_spill] sm:$0xff] %v2689_v35  ;;  %v2703_v40 = vpop.f32.mrb[23].mxu0  ;;  %v590_v35 = vmul.f32 0.01, %v2603_v53 }
 0x109   :  { %3916 = vst [vmem:[#allocation5_spill] sm:$0xff] %v2703_v40 }
 0x10b   :  { %v364_v8 = vpop.f32.mrb[24].mxu0 }
 0x10c   :  { %v603_v17 = vmul.f32 0.01, %v364_v8  ;;  %v366_v21 = vpop.f32.mrb[25].mxu0 }
 0x10d   :  { %v604_v34 = vmul.f32 0.01, %v366_v21 }
 0x10e   :  { %v699_v45 = vmax.f32 %v364_v8, %v603_v17 }
 0x10f   :  { %v700_v63 = vmax.f32 %v366_v21, %v604_v34  ;;  %v370_v8 = vpop.f32.mrb[26].mxu0  ;;  %v2841_v21 = vld [vmem:[%s3854_s4 + $0x168] sm:$0xff]  ;;  %v2844_v34 = vadd.f32 %v2686_v33, %v790_v50  ;;  %v2859_v50 = vld [vmem:[%s3854_s4 + $0x1f8] sm:$0xff] }
 0x110   :  { %v807_v42 = vmul.f32 %v2625_v9, %v699_v45  ;;  %v605_v41 = vmul.f32 0.01, %v370_v8  ;;  %v372_v40 = vpop.f32.mrb[27].mxu0 }
 0x111   :  { %v808_v18 = vmul.f32 %v2631_v13, %v700_v63  ;;  %v606_v51 = vmul.f32 0.01, %v372_v40 }
 0x112   :  { %v915_v45 = vadd.f32 %v2666_v26, %v807_v42  ;;  %v701_v63 = vmax.f32 %v370_v8, %v605_v41 }
 0x113   :  { %v916_v17 = vadd.f32 %v2686_v33, %v808_v18  ;;  %v702_v39 = vmax.f32 %v372_v40, %v606_v51  ;;  %v376_v47 = vpop.f32.mrb[28].mxu0  ;;  %v2866_v40 = vadd.f32 %v2666_v26, %v791_v7  ;;  %v686_v18 = vmax.f32 %v2603_v53, %v590_v35 }
 0x114   :  { %v987_v41 = vmax.f32 %v2736_v59, %v915_v45  ;;  %v809_v42 = vmul.f32 %v2625_v9, %v701_v63  ;;  %v607_v62 = vmul.f32 0.01, %v376_v47  ;;  %v378_v8 = vpop.f32.mrb[29].mxu0  ;;  %v2875_v63 = vadd.f32 %v2686_v33, %v792_v49 }
 0x115   :  { %v810_v51 = vmul.f32 %v2631_v13, %v702_v39  ;;  %v608_v10 = vmul.f32 0.01, %v378_v8  ;;  %v988_v27 = vmax.f32 %v2753_v5, %v916_v17  ;;  %v591_v5 = vmul.f32 0.01, %v2605_v54 }
 0x116   :  { %v917_v15 = vadd.f32 %v2666_v26, %v809_v42  ;;  %v703_v59 = vmax.f32 %v376_v47, %v607_v62  ;;  %v2887_v47 = vld [vmem:[%s3854_s4 + $0x178] sm:$0xff]  ;;  %v793_v62 = vmul.f32 %v2625_v9, %v685_v28 }
 0x117   :  { %v704_v7 = vmax.f32 %v378_v8, %v608_v10  ;;  %v382_v16 = vpop.f32.mrb[30].mxu0  ;;  %1234 = vmatprep.mubr.f32.mxu0 %v988_v27  ;;  %v918_v39 = vadd.f32 %v2686_v33, %v810_v51  ;;  %v592_v27 = vmul.f32 0.01, %v2607_v55 }
 0x118   :  { %v811_v17 = vmul.f32 %v2625_v9, %v703_v59  ;;  %v609_v53 = vmul.f32 0.01, %v382_v16  ;;  %v384_v35 = vpop.f32.mrb[31].mxu0  ;;  %1235 = vmatmul.mubr.f32.vlgmr.msra.gmra.mrb[96].mxu0 %v987_v41  ;;  %v2892_v10 = vmax.f32 %v2770_v14, %v917_v15  ;;  %v2104_v59 = vpack.c.bf16 %v2887_v47, %v2882_v52 }
 0x119   :  { %v812_v49 = vmul.f32 %v2631_v13, %v704_v7  ;;  %v610_v32 = vmul.f32 0.01, %v384_v35  ;;  %v2897_v42 = vmax.f32 %v2787_v38, %v918_v39  ;;  %v794_v41 = vmul.f32 %v2631_v13, %v686_v18 }
 0x11a   :  { %3924 = vst [vmem:[#allocation13_spill] sm:$0xff] %v2892_v10  ;;  %v919_v8 = vadd.f32 %v2666_v26, %v811_v17  ;;  %v705_v51 = vmax.f32 %v382_v16, %v609_v53  ;;  %v593_v15 = vmul.f32 0.01, %v2609_v57  ;;  %v687_v38 = vmax.f32 %v2605_v54, %v591_v5 }
 0x11b   :  { %3925 = vst [vmem:[#allocation14_spill] sm:$0xff] %v2897_v42  ;;  %v920_v14 = vadd.f32 %v2686_v33, %v812_v49  ;;  %v706_v45 = vmax.f32 %v384_v35, %v610_v32  ;;  %v388_v7 = vpop.f32.mrb[32].mxu0  ;;  %1239 = vmatprep.mubr.f32.mxu1 %v2897_v42  ;;  %v688_v18 = vmax.f32 %v2607_v55, %v592_v27  ;;  %v594_v32 = vmul.f32 0.01, %v2611_v58  ;;  %v3353_v42 = vld [vmem:[%s3854_s4 + $0x278] sm:$0xff] }
 0x11c   :  { %v813_v28 = vmul.f32 %v2625_v9, %v705_v51  ;;  %v611_v39 = vmul.f32 0.01, %v388_v7  ;;  %v390_v17 = vpop.f32.mrb[33].mxu0  ;;  %1240 = vmatmul.mubr.f32.vlgmr.msra.gmra.mrb[0].mxu1 %v2892_v10  ;;  %v2911_v16 = vmax.f32 %v2802_v0, %v919_v8  ;;  %v3928_v54 = vpack.c.bf16 %v2647_v20, %v2642_v19  ;;  %v3348_v10 = vld [vmem:[%s3854_s4 + $0x270] sm:$0xff]  ;;  %3987 = vst [vmem:[#allocation40_spill] sm:$0xff] %v3353_v42 }
 0x11d   :  { %v814_v53 = vmul.f32 %v2631_v13, %v706_v45  ;;  %v612_v49 = vmul.f32 0.01, %v390_v17  ;;  %v2916_v35 = vmax.f32 %v2818_v46, %v920_v14  ;;  %v901_v5 = vadd.f32 %v2666_v26, %v793_v62  ;;  %3986 = vst [vmem:[#allocation39_spill] sm:$0xff] %v3348_v10 }
 0x11e   :  { %3926 = vst [vmem:[#allocation15_spill] sm:$0xff] %v2911_v16  ;;  %2077 = vmatpush3.bf16.msra.mxu1 %v3928_v54  ;;  %v921_v51 = vadd.f32 %v2666_v26, %v813_v28  ;;  %v707_v0 = vmax.f32 %v388_v7, %v611_v39  ;;  %v3929_v55 = vpack.c.bf16 %v2658_v23, %v2653_v22  ;;  %v595_v39 = vmul.f32 0.01, %v2613_v60 }
 0x11f   :  { %3927 = vst [vmem:[#allocation16_spill] sm:$0xff] %v2916_v35  ;;  %v902_v45 = vadd.f32 %v2686_v33, %v794_v41  ;;  %v689_v46 = vmax.f32 %v2609_v57, %v593_v15  ;;  %v922_v27 = vadd.f32 %v2686_v33, %v814_v53  ;;  %v708_v8 = vmax.f32 %v390_v17, %v612_v49  ;;  %v394_v19 = vpop.f32.mrb[34].mxu0 }
 0x120   :  { %2079 = vmatprep.subr.bf16.mxu1 %v3929_v55  ;;  %1244 = vmatprep.mubr.f32.mxu1 %v2916_v35  ;;  %v795_v20 = vmul.f32 %v2625_v9, %v687_v38  ;;  %v815_v62 = vmul.f32 %v2625_v9, %v707_v0  ;;  %v613_v14 = vmul.f32 0.01, %v394_v19  ;;  %v396_v7 = vpop.f32.mrb[35].mxu0  ;;  %v2935_v22 = vmax.f32 %v2824_v3, %v921_v51 }
 0x121   :  { %1245 = vmatmul.mubr.f32.gmra.mrb[2].mxu1 %v2911_v16  ;;  %v796_v23 = vmul.f32 %v2631_v13, %v688_v18  ;;  %v816_v57 = vmul.f32 %v2631_v13, %v708_v8  ;;  %v614_v41 = vmul.f32 0.01, %v396_v7  ;;  %v2940_v15 = vmax.f32 %v2844_v34, %v922_v27  ;;  %v3332_v16 = vld [vmem:[%s3854_s4 + $0x2f0] sm:$0xff] }
 0x122   :  { %3930 = vst [vmem:[#allocation17_spill] sm:$0xff] %v2935_v22  ;;  %v3932_v38 = vpack.c.bf16 %v2673_v29, %v2663_v24  ;;  %v690_v28 = vmax.f32 %v2611_v58, %v594_v32  ;;  %v923_v17 = vadd.f32 %v2666_v26, %v815_v62  ;;  %v709_v3 = vmax.f32 %v394_v19, %v613_v14 }
 0x123   :  { %3931 = vst [vmem:[#allocation18_spill] sm:$0xff] %v2940_v15  ;;  %v3933_v18 = vpack.c.bf16 %v2683_v31, %v2678_v30  ;;  %v797_v53 = vmul.f32 %v2625_v9, %v689_v46  ;;  %v596_v34 = vmul.f32 0.01, %v2615_v61  ;;  %v924_v49 = vadd.f32 %v2686_v33, %v816_v57  ;;  %v400_v24 = vpop.f32.mrb[36].mxu0  ;;  %1249 = vmatprep.mubr.f32.mxu1 %v2940_v15  ;;  %v3327_v15 = vld [vmem:[%s3854_s4 + $0x268] sm:$0xff] }
 0x124   :  { %2081 = vmatpush3.bf16.msra.mxu1 %v3932_v38  ;;  %v710_v54 = vmax.f32 %v396_v7, %v614_v41  ;;  %v903_v58 = vadd.f32 %v2666_v26, %v795_v20  ;;  %v817_v29 = vmul.f32 %v2625_v9, %v709_v3  ;;  %v615_v32 = vmul.f32 0.01, %v400_v24  ;;  %v402_v51 = vpop.f32.mrb[37].mxu0  ;;  %v2992_v41 = vld [vmem:[%s3854_s4 + $0x288] sm:$0xff]  ;;  %3983 = vst [vmem:[#allocation36_spill] sm:$0xff] %v3327_v15 }
 0x125   :  { %2083 = vmatprep.subr.bf16.mxu1 %v3933_v18  ;;  %1250 = vmatmul.mubr.f32.gmra.mrb[4].mxu1 %v2935_v22  ;;  %v2959_v30 = vmax.f32 %v2866_v40, %v923_v17  ;;  %v904_v31 = vadd.f32 %v2686_v33, %v796_v23  ;;  %v616_v55 = vmul.f32 0.01, %v402_v51  ;;  %v2964_v46 = vmax.f32 %v2875_v63, %v924_v49  ;;  %v3309_v22 = vld [vmem:[%s3854_s4 + $0x2e8] sm:$0xff] }
 0x126   :  { %v818_v0 = vmul.f32 %v2631_v13, %v710_v54  ;;  %v3936_v27 = vpack.c.bf16 %v2699_v37, %v2694_v36  ;;  %v798_v8 = vmul.f32 %v2631_v13, %v690_v28  ;;  %v691_v19 = vmax.f32 %v2613_v60, %v595_v39  ;;  %v2982_v60 = vld [vmem:[%s3854_s4 + $0x280] sm:$0xff]  ;;  %3980 = vst [vmem:[#allocation33_spill] sm:$0xff] %v3309_v22 }
 0x127   :  { %3934 = vst [vmem:[#allocation19_spill] sm:$0xff] %v2959_v30  ;;  %3935 = vst [vmem:[#allocation20_spill] sm:$0xff] %v2964_v46  ;;  %v925_v20 = vadd.f32 %v2666_v26, %v817_v29  ;;  %v711_v40 = vmax.f32 %v400_v24, %v615_v32  ;;  %v3937_v62 = vpack.c.bf16 %v2717_v44, %v2712_v43  ;;  %v406_v36 = vpop.f32.mrb[38].mxu0  ;;  %1254 = vmatprep.mubr.f32.mxu1 %v2964_v46  ;;  %v3304_v46 = vld [vmem:[%s3854_s4 + $0x2e0] sm:$0xff] }
 0x128   :  { %2085 = vmatpush3.bf16.msra.mxu1 %v3936_v27  ;;  %v905_v14 = vadd.f32 %v2666_v26, %v797_v53  ;;  %v692_v63 = vmax.f32 %v2615_v61, %v596_v34  ;;  %v926_v7 = vadd.f32 %v2686_v33, %v818_v0  ;;  %v712_v23 = vmax.f32 %v402_v51, %v616_v55  ;;  %v408_v57 = vpop.f32.mrb[39].mxu0 }
 0x129   :  { %2087 = vmatprep.subr.bf16.mxu1 %v3937_v62  ;;  %v597_v37 = vmul.f32 0.01, %v2620_v4  ;;  %v819_v43 = vmul.f32 %v2625_v9, %v711_v40  ;;  %v617_v44 = vmul.f32 0.01, %v406_v36  ;;  %1255 = vmatmul.mubr.f32.gmra.mrb[6].mxu1 %v2959_v30  ;;  %v2987_v61 = vmax.f32 %v901_v5, %v925_v20  ;;  %v3945_v20 = vld [vmem:[#allocation2_spill] sm:$0xff]  ;;  %v3286_v30 = vld [vmem:[%s3854_s4 + $0x250] sm:$0xff] }
 0x12a   :  { %v598_v38 = vmul.f32 0.01, %v2622_v6  ;;  %v820_v28 = vmul.f32 %v2631_v13, %v712_v23  ;;  %v618_v39 = vmul.f32 0.01, %v408_v57  ;;  %v2996_v17 = vmax.f32 %v902_v45, %v926_v7  ;;  %v3947_v7 = vld [vmem:[#allocation6_spill] sm:$0xff]  ;;  %3976 = vst [vmem:[#allocation29_spill] sm:$0xff] %v3286_v30 }
 0x12b   :  { %3938 = vst [vmem:[#allocation21_spill] sm:$0xff] %v2987_v61  ;;  %v3940_v3 = vpack.c.bf16 %v2733_v56, %v2728_v48  ;;  %v906_v18 = vadd.f32 %v2686_v33, %v798_v8  ;;  %v799_v5 = vmul.f32 %v2625_v9, %v691_v19  ;;  %v927_v53 = vadd.f32 %v2666_v26, %v819_v43  ;;  %v412_v29 = vpop.f32.mrb[40].mxu0 }
 0x12c   :  { %3939 = vst [vmem:[#allocation22_spill] sm:$0xff] %v2996_v17  ;;  %v713_v34 = vmax.f32 %v406_v36, %v617_v44  ;;  %v3941_v49 = vpack.c.bf16 %v2750_v2, %v2745_v1  ;;  %v800_v54 = vmul.f32 %v2631_v13, %v692_v63  ;;  %v928_v45 = vadd.f32 %v2686_v33, %v820_v28  ;;  %v414_v0 = vpop.f32.mrb[41].mxu0  ;;  %v3949_v36 = vld [vmem:[#allocation3_spill] sm:$0xff] }
 0x12d   :  { %2089 = vmatpush3.bf16.msra.mxu1 %v3940_v3  ;;  %v714_v24 = vmax.f32 %v408_v57, %v618_v39  ;;  %1259 = vmatprep.mubr.f32.mxu1 %v2996_v17  ;;  %v2106_v48 = vpack.c.bf16 %v2992_v41, %v2982_v60  ;;  %v693_v56 = vmax.f32 %v2620_v4, %v597_v37  ;;  %v619_v51 = vmul.f32 0.01, %v412_v29  ;;  %v3281_v17 = vld [vmem:[%s3854_s4 + $0x2d8] sm:$0xff] }
 0x12e   :  { %2091 = vmatprep.subr.bf16.mxu1 %v3941_v49  ;;  %v821_v32 = vmul.f32 %v2625_v9, %v713_v34  ;;  %1260 = vmatmul.mubr.f32.gmra.mrb[8].mxu1 %v2987_v61  ;;  %v3015_v1 = vmax.f32 %v903_v58, %v927_v53  ;;  %v694_v2 = vmax.f32 %v2622_v6, %v598_v38  ;;  %v620_v27 = vmul.f32 0.01, %v414_v0  ;;  %v3946_v58 = vld [vmem:[#allocation7_spill] sm:$0xff]  ;;  %v3952_v34 = vld [vmem:[#allocation9_spill] sm:$0xff]  ;;  %v3953_v49 = vld [vmem:[#allocation8_spill] sm:$0xff] }
 0x12f   :  { %v822_v55 = vmul.f32 %v2631_v13, %v714_v24  ;;  %v3019_v8 = vmax.f32 %v904_v31, %v928_v45  ;;  %v3944_v19 = vpack.c.bf16 %v2767_v12, %v2762_v11  ;;  %v907_v4 = vadd.f32 %v2666_v26, %v799_v5  ;;  %v418_v11 = vpop.f32.mrb[42].mxu0  ;;  %v3955_v24 = vld [vmem:[#allocation4_spill] sm:$0xff]  ;;  %3979 = vst [vmem:[#allocation32_spill] sm:$0xff] %v3304_v46 }
 0x130   :  { %3942 = vst [vmem:[#allocation23_spill] sm:$0xff] %v3015_v1  ;;  %v599_v40 = vmul.f32 0.01, %v3945_v20  ;;  %v929_v62 = vadd.f32 %v2666_v26, %v821_v32  ;;  %v715_v63 = vmax.f32 %v412_v29, %v619_v51  ;;  %v3948_v23 = vpack.c.bf16 %v3946_v58, %v3947_v7  ;;  %v420_v38 = vpop.f32.mrb[43].mxu0  ;;  %v3957_v51 = vld [vmem:[#allocation10_spill] sm:$0xff]  ;;  %3984 = vst [vmem:[#allocation37_spill] sm:$0xff] %v3332_v16 }
 0x131   :  { %3943 = vst [vmem:[#allocation24_spill] sm:$0xff] %v3019_v8  ;;  %2093 = vmatpush3.bf16.msra.mxu1 %v3944_v19  ;;  %v908_v6 = vadd.f32 %v2686_v33, %v800_v54  ;;  %v600_v31 = vmul.f32 0.01, %v3949_v36  ;;  %v930_v37 = vadd.f32 %v2686_v33, %v822_v55  ;;  %v716_v43 = vmax.f32 %v414_v0, %v620_v27  ;;  %v3959_v55 = vld [vmem:[#allocation5_spill] sm:$0xff] }
 0x132   :  { %2095 = vmatprep.subr.bf16.mxu1 %v3948_v23  ;;  %1264 = vmatprep.mubr.f32.mxu1 %v3019_v8  ;;  %v801_v12 = vmul.f32 %v2625_v9, %v693_v56  ;;  %v823_v44 = vmul.f32 %v2625_v9, %v715_v63  ;;  %v621_v57 = vmul.f32 0.01, %v418_v11  ;;  %v3037_v28 = vmax.f32 %v905_v14, %v929_v62  ;;  %v3956_v14 = vld [vmem:[#allocation11_spill] sm:$0xff] }
 0x133   :  { %1265 = vmatmul.mubr.f32.gmra.mrb[10].mxu1 %v3015_v1  ;;  %v802_v39 = vmul.f32 %v2631_v13, %v694_v2  ;;  %v824_v3 = vmul.f32 %v2631_v13, %v716_v43  ;;  %v622_v5 = vmul.f32 0.01, %v420_v38  ;;  %v3041_v53 = vmax.f32 %v906_v18, %v930_v37  ;;  %v424_v62 = vpop.f32.mrb[44].mxu0  ;;  %v3962_v43 = vld [vmem:[#allocation12_spill] sm:$0xff] }
 0x134   :  { %3950 = vst [vmem:[#allocation2_spill] sm:$0xff] %v3037_v28  ;;  %v3954_v54 = vpack.c.bf16 %v3952_v34, %v3953_v49  ;;  %v695_v45 = vmax.f32 %v3945_v20, %v599_v40  ;;  %v601_v29 = vmul.f32 0.01, %v3955_v24  ;;  %v931_v56 = vadd.f32 %v2666_v26, %v823_v44  ;;  %v426_v58 = vpop.f32.mrb[45].mxu0  ;;  %v3270_v1 = vld [vmem:[%s3854_s4 + $0x2d0] sm:$0xff] }
 0x135   :  { %3951 = vst [vmem:[#allocation7_spill] sm:$0xff] %v3041_v53  ;;  %v717_v32 = vmax.f32 %v418_v11, %v621_v57  ;;  %v3958_v0 = vpack.c.bf16 %v3956_v14, %v3957_v51  ;;  %v696_v2 = vmax.f32 %v3949_v36, %v600_v31  ;;  %v602_v18 = vmul.f32 0.01, %v3959_v55  ;;  %1269 = vmatprep.mubr.f32.mxu1 %v3041_v53  ;;  %v3265_v53 = vld [vmem:[%s3854_s4 + $0x248] sm:$0xff] }
 0x136   :  { %2097 = vmatpush3.bf16.msra.mxu1 %v3954_v54  ;;  %v932_v27 = vadd.f32 %v2686_v33, %v824_v3  ;;  %v718_v19 = vmax.f32 %v420_v38, %v622_v5  ;;  %v909_v20 = vadd.f32 %v2666_v26, %v801_v12  ;;  %v623_v63 = vmul.f32 0.01, %v424_v62  ;;  %3975 = vst [vmem:[#allocation28_spill] sm:$0xff] %v3270_v1 }
 0x137   :  { %2099 = vmatprep.subr.bf16.mxu1 %v3958_v0  ;;  %v825_v40 = vmul.f32 %v2625_v9, %v717_v32  ;;  %1270 = vmatmul.mubr.f32.gmra.mrb[12].mxu1 %v3037_v28  ;;  %v3059_v7 = vmax.f32 %v907_v4, %v931_v56  ;;  %v910_v23 = vadd.f32 %v2686_v33, %v802_v39  ;;  %v624_v31 = vmul.f32 0.01, %v426_v58  ;;  %v3260_v28 = vld [vmem:[%s3854_s4 + $0x240] sm:$0xff] }
 0x138   :  { %v826_v36 = vmul.f32 %v2631_v13, %v718_v19  ;;  %v3063_v37 = vmax.f32 %v908_v6, %v932_v27  ;;  %v3963_v11 = vpack.c.bf16 %v2841_v21, %v3962_v43  ;;  %v803_v12 = vmul.f32 %v2625_v9, %v695_v45  ;;  %v430_v21 = vpop.f32.mrb[46].mxu0 }
 0x139   :  { %3960 = vst [vmem:[#allocation6_spill] sm:$0xff] %v3059_v7  ;;  %v697_v44 = vmax.f32 %v3955_v24, %v601_v29  ;;  %v933_v57 = vadd.f32 %v2666_v26, %v825_v40  ;;  %v719_v38 = vmax.f32 %v424_v62, %v623_v63  ;;  %v3964_v4 = vpack.c.bf16 %v2859_v50, %v2854_v25  ;;  %v432_v54 = vpop.f32.mrb[47].mxu0 }
 0x13a   :  { %3961 = vst [vmem:[#allocation3_spill] sm:$0xff] %v3063_v37  ;;  %2101 = vmatpush3.bf16.msra.mxu1 %v3963_v11  ;;  %v804_v39 = vmul.f32 %v2631_v13, %v696_v2  ;;  %v698_v6 = vmax.f32 %v3959_v55, %v602_v18  ;;  %v934_v3 = vadd.f32 %v2686_v33, %v826_v36  ;;  %v625_v49 = vmul.f32 0.01, %v430_v21 }
 0x13b   :  { %2103 = vmatprep.subr.bf16.mxu1 %v3964_v4  ;;  %v720_v5 = vmax.f32 %v426_v58, %v624_v31  ;;  %1274 = vmatprep.mubr.f32.mxu1 %v3063_v37  ;;  %v827_v34 = vmul.f32 %v2625_v9, %v719_v38  ;;  %v3080_v45 = vmax.f32 %v909_v20, %v933_v57  ;;  %v626_v50 = vmul.f32 0.01, %v432_v54  ;;  %v3097_v52 = vpop.f32.mrb[48].mxu0 }
 0x13c   :  { %1275 = vmatmul.mubr.f32.gmra.mrb[14].mxu1 %v3059_v7  ;;  %v3083_v24 = vmax.f32 %v910_v23, %v934_v3  ;;  %v911_v29 = vadd.f32 %v2666_v26, %v803_v12  ;;  %v805_v56 = vmul.f32 %v2625_v9, %v697_v44  ;;  %v721_v14 = vmax.f32 %v430_v21, %v625_v49  ;;  %v3166_v49 = vld [vmem:[%s3854_s4 + $0x200] sm:$0xff] }
 0x13d   :  { %3965 = vst [vmem:[#allocation9_spill] sm:$0xff] %v3080_v45  ;;  %v828_v25 = vmul.f32 %v2631_v13, %v720_v5  ;;  %v935_v32 = vadd.f32 %v2666_v26, %v827_v34  ;;  %v912_v51 = vadd.f32 %v2686_v33, %v804_v39  ;;  %v806_v0 = vmul.f32 %v2631_v13, %v698_v6 }
 0x13e   :  { %3966 = vst [vmem:[#allocation8_spill] sm:$0xff] %v3083_v24  ;;  %2105 = vmatpush3.bf16.msra.mxu1 %v2104_v59  ;;  %v722_v55 = vmax.f32 %v432_v54, %v626_v50  ;;  %1279 = vmatprep.mubr.f32.mxu1 %v3083_v24  ;;  %v829_v47 = vmul.f32 %v2625_v9, %v721_v14  ;;  %v3101_v59 = vpop.f32.mrb[49].mxu0  ;;  %v3171_v54 = vld [vmem:[%s3854_s4 + $0x208] sm:$0xff]  ;;  %v3181_v50 = vld [vmem:[%s3854_s4 + $0x298] sm:$0xff] }
 0x13f   :  { %2107 = vmatprep.subr.bf16.mxu1 %v2106_v48  ;;  %v936_v2 = vadd.f32 %v2686_v33, %v828_v25  ;;  %v3104_v18 = vmax.f32 %v911_v29, %v935_v32  ;;  %v3110_v48 = vadd.f32 %v2666_v26, %v805_v56  ;;  %v3116_v19 = vadd.f32 %v2686_v33, %v806_v0  ;;  %v3121_v20 = vpop.f32.mrb[50].mxu0  ;;  %v3176_v25 = vld [vmem:[%s3854_s4 + $0x290] sm:$0xff]  ;;  %v3191_v56 = vld [vmem:[%s3854_s4 + $0x218] sm:$0xff]  ;;  %v3196_v32 = vld [vmem:[%s3854_s4 + $0x2a0] sm:$0xff] }
 0x140   :  { %1280 = vmatmul.mubr.f32.gmra.mrb[16].mxu1 %v3080_v45  ;;  %v830_v60 = vmul.f32 %v2631_v13, %v722_v55  ;;  %v3113_v27 = vadd.f32 %v2666_v26, %v829_v47  ;;  %v3124_v40 = vpop.f32.mrb[51].mxu0  ;;  %v3186_v29 = vld [vmem:[%s3854_s4 + $0x210] sm:$0xff]  ;;  %v3201_v14 = vld [vmem:[%s3854_s4 + $0x2a8] sm:$0xff]  ;;  %v628_v0 = vmul.f32 0.01, %v3101_v59 }
 0x141   :  { %3967 = vst [vmem:[#allocation4_spill] sm:$0xff] %v3104_v18  ;;  %v3107_v41 = vmax.f32 %v912_v51, %v936_v2  ;;  %3969 = vst [vmem:[#allocation10_spill] sm:$0xff] %v3110_v48  ;;  %v627_v51 = vmul.f32 0.01, %v3097_v52  ;;  %v3208_v2 = vld [vmem:[%s3854_s4 + $0x220] sm:$0xff]  ;;  %v3213_v55 = vld [vmem:[%s3854_s4 + $0x228] sm:$0xff] }
 0x142   :  { %3970 = vst [vmem:[#allocation5_spill] sm:$0xff] %v3113_v27  ;;  %3971 = vst [vmem:[#allocation12_spill] sm:$0xff] %v3116_v19  ;;  %v3119_v62 = vadd.f32 %v2686_v33, %v830_v60  ;;  %v3218_v47 = vld [vmem:[%s3854_s4 + $0x2b0] sm:$0xff]  ;;  %v3223_v60 = vld [vmem:[%s3854_s4 + $0x2b8] sm:$0xff]  ;;  %v629_v63 = vmul.f32 0.01, %v3121_v20  ;;  %v724_v8 = vmax.f32 %v3101_v59, %v628_v0 }
 0x143   :  { %3968 = vst [vmem:[#allocation11_spill] sm:$0xff] %v3107_v41  ;;  %1284 = vmatprep.mubr.f32.mxu1 %v3107_v41  ;;  %v3131_v23 = vpop.f32.mrb[52].mxu0  ;;  %v630_v58 = vmul.f32 0.01, %v3124_v40  ;;  %v3232_v48 = vld [vmem:[%s3854_s4 + $0x230] sm:$0xff]  ;;  %v3245_v41 = vld [vmem:[%s3854_s4 + $0x2c0] sm:$0xff]  ;;  %v723_v7 = vmax.f32 %v3097_v52, %v627_v51 }
 0x144   :  { %3972 = vst [vmem:[#allocation25_spill] sm:$0xff] %v3119_v62  ;;  %1285 = vmatmul.mubr.f32.gmra.mrb[18].mxu1 %v3104_v18  ;;  %v3133_v36 = vpop.f32.mrb[53].mxu0  ;;  %v631_v62 = vmul.f32 0.01, %v3131_v23  ;;  %v3240_v18 = vld [vmem:[%s3854_s4 + $0x238] sm:$0xff]  ;;  %v3250_v45 = vld [vmem:[%s3854_s4 + $0x2c8] sm:$0xff]  ;;  %v725_v59 = vmax.f32 %v3121_v20, %v629_v63 }
 0x145   :  { %v632_v24 = vmul.f32 0.01, %v3133_v36  ;;  %v3291_v52 = vld [vmem:[%s3854_s4 + $0x258] sm:$0xff]  ;;  %v726_v51 = vmax.f32 %v3124_v40, %v630_v58  ;;  %v3314_v20 = vld [vmem:[%s3854_s4 + $0x260] sm:$0xff] }
 0x146   :  { %3977 = vst [vmem:[#allocation30_spill] sm:$0xff] %v3291_v52  ;;  %3981 = vst [vmem:[#allocation34_spill] sm:$0xff] %v3314_v20  ;;  %v727_v40 = vmax.f32 %v3131_v23, %v631_v62  ;;  %v3337_v62 = vld [vmem:[%s3854_s4 + $0x2f8] sm:$0xff] }
 0x147   :  { %v3135_v31 = vpop.f32.mrb[54].mxu0  ;;  %3985 = vst [vmem:[#allocation38_spill] sm:$0xff] %v3337_v62  ;;  %v728_v23 = vmax.f32 %v3133_v36, %v632_v24  ;;  %v831_v24 = vmul.f32 %v2625_v9, %v723_v7  ;;  %v832_v36 = vmul.f32 %v2631_v13, %v724_v8  ;;  %v833_v7 = vmul.f32 %v2625_v9, %v725_v59 }
 0x148   :  { %v3137_v43 = vpop.f32.mrb[55].mxu0  ;;  %v633_v63 = vmul.f32 0.01, %v3135_v31  ;;  %v834_v8 = vmul.f32 %v2631_v13, %v726_v51  ;;  %v835_v46 = vmul.f32 %v2625_v9, %v727_v40 }
 0x149   :  { %v634_v37 = vmul.f32 0.01, %v3137_v43  ;;  %v836_v59 = vmul.f32 %v2631_v13, %v728_v23  ;;  %v939_v20 = vadd.f32 %v2666_v26, %v831_v24  ;;  %v940_v35 = vadd.f32 %v2686_v33, %v832_v36 }
 0x14a   :  { %v729_v22 = vmax.f32 %v3135_v31, %v633_v63  ;;  %v941_v63 = vadd.f32 %v2666_v26, %v833_v7  ;;  %v942_v16 = vadd.f32 %v2686_v33, %v834_v8 }
 0x14b   :  { %v3139_v11 = vpop.f32.mrb[56].mxu0  ;;  %v730_v51 = vmax.f32 %v3137_v43, %v634_v37  ;;  %v3392_v37 = vadd.f32 %v2666_v26, %v835_v46 }
 0x14c   :  { %v3141_v12 = vpop.f32.mrb[57].mxu0  ;;  %v635_v40 = vmul.f32 0.01, %v3139_v11  ;;  %v837_v43 = vmul.f32 %v2625_v9, %v729_v22 }
 0x14d   :  { %v636_v52 = vmul.f32 0.01, %v3141_v12 }
 0x14f   :  { %v3143_v44 = vpop.f32.mrb[58].mxu0  ;;  %v732_v22 = vmax.f32 %v3141_v12, %v636_v52 }
 0x150   :  { %v3145_v57 = vpop.f32.mrb[59].mxu0 }
 0x153   :  { %v3147_v38 = vpop.f32.mrb[60].mxu0 }
 0x154   :  { %v3149_v4 = vpop.f32.mrb[61].mxu0 }
 0x157   :  { %v3151_v39 = vpop.f32.mrb[62].mxu0 }
 0x158   :  { %v3153_v6 = vpop.f32.mrb[63].mxu0 }
 0x15b   :  { %v3155_v3 = vpop.f32.mrb[64].mxu0 }
 0x15c   :  { %v3157_v5 = vpop.f32.mrb[65].mxu0 }
 0x15f   :  { %v3159_v21 = vpop.f32.mrb[66].mxu0 }
 0x160   :  { %v3161_v34 = vpop.f32.mrb[67].mxu0 }
 0x163   :  { %v3227_v27 = vpop.f32.mrb[68].mxu0 }
 0x164   :  { %3973 = vst [vmem:[#allocation26_spill] sm:$0xff] %v3227_v27  ;;  %v3235_v19 = vpop.f32.mrb[69].mxu0 }
 0x165   :  { %3974 = vst [vmem:[#allocation27_spill] sm:$0xff] %v3235_v19 }
 0x167   :  { %v3295_v0 = vpop.f32.mrb[70].mxu0 }
 0x168   :  { %3978 = vst [vmem:[#allocation31_spill] sm:$0xff] %v3295_v0  ;;  %v3318_v58 = vpop.f32.mrb[71].mxu0  ;;  %v3369_v0 = vld [vmem:[%s3854_s4 + $0x388] sm:$0xff] }
 0x169   :  { %3982 = vst [vmem:[#allocation35_spill] sm:$0xff] %v3318_v58  ;;  %v3364_v58 = vld [vmem:[%s3854_s4 + $0x380] sm:$0xff]  ;;  %3989 = vst [vmem:[#allocation42_spill] sm:$0xff] %v3369_v0 }
 0x16a   :  { %3988 = vst [vmem:[#allocation41_spill] sm:$0xff] %v3364_v58  ;;  %v3397_v58 = vadd.f32 %v2686_v33, %v836_v59 }
 0x16b   :  { %v508_v19 = vpop.f32.mrb[72].mxu0 }
 0x16c   :  { %v651_v27 = vmul.f32 0.01, %v508_v19  ;;  %v510_v30 = vpop.f32.mrb[73].mxu0 }
 0x16d   :  { %v652_v1 = vmul.f32 0.01, %v510_v30 }
 0x16e   :  { %v747_v31 = vmax.f32 %v508_v19, %v651_v27  ;;  %v838_v27 = vmul.f32 %v2631_v13, %v730_v51  ;;  %v3408_v51 = vadd.f32 %v2666_v26, %v837_v43 }
 0x16f   :  { %v748_v23 = vmax.f32 %v510_v30, %v652_v1  ;;  %v514_v10 = vpop.f32.mrb[74].mxu0  ;;  %v731_v30 = vmax.f32 %v3139_v11, %v635_v40  ;;  %v637_v1 = vmul.f32 0.01, %v3143_v44 }
 0x170   :  { %v855_v24 = vmul.f32 %v2625_v9, %v747_v31  ;;  %v653_v61 = vmul.f32 0.01, %v514_v10  ;;  %v516_v36 = vpop.f32.mrb[75].mxu0  ;;  %v638_v31 = vmul.f32 0.01, %v3145_v57  ;;  %v3412_v15 = vadd.f32 %v2686_v33, %v838_v27 }
 0x171   :  { %v856_v19 = vmul.f32 %v2631_v13, %v748_v23  ;;  %v654_v7 = vmul.f32 0.01, %v516_v36  ;;  %v839_v52 = vmul.f32 %v2625_v9, %v731_v30 }
 0x172   :  { %v963_v46 = vadd.f32 %v2666_v26, %v855_v24  ;;  %v749_v8 = vmax.f32 %v514_v10, %v653_v61  ;;  %v733_v24 = vmax.f32 %v3143_v44, %v637_v1 }
 0x173   :  { %v964_v0 = vadd.f32 %v2686_v33, %v856_v19  ;;  %v750_v59 = vmax.f32 %v516_v36, %v654_v7  ;;  %v520_v42 = vpop.f32.mrb[76].mxu0  ;;  %v734_v19 = vmax.f32 %v3145_v57, %v638_v31  ;;  %v3990_v57 = vpack.c.bf16 %v3171_v54, %v3166_v49 }
 0x174   :  { %v1011_v23 = vmax.f32 %v939_v20, %v963_v46  ;;  %v857_v62 = vmul.f32 %v2625_v9, %v749_v8  ;;  %v655_v11 = vmul.f32 0.01, %v520_v42  ;;  %v522_v40 = vpop.f32.mrb[77].mxu0  ;;  %v840_v20 = vmul.f32 %v2631_v13, %v732_v22 }
 0x175   :  { %v858_v10 = vmul.f32 %v2631_v13, %v750_v59  ;;  %v656_v61 = vmul.f32 0.01, %v522_v40  ;;  %v1012_v12 = vmax.f32 %v940_v35, %v964_v0  ;;  %v639_v8 = vmul.f32 0.01, %v3147_v38 }
 0x176   :  { %v965_v36 = vadd.f32 %v2666_v26, %v857_v62  ;;  %v751_v43 = vmax.f32 %v520_v42, %v655_v11  ;;  %v640_v42 = vmul.f32 0.01, %v3149_v4  ;;  %v947_v31 = vadd.f32 %v2666_v26, %v839_v52 }
 0x177   :  { %v966_v7 = vadd.f32 %v2686_v33, %v858_v10  ;;  %v752_v46 = vmax.f32 %v522_v40, %v656_v61  ;;  %v526_v27 = vpop.f32.mrb[78].mxu0  ;;  %1354 = vmatprep.mubr.f32.mxu1 %v1012_v12  ;;  %v841_v59 = vmul.f32 %v2625_v9, %v733_v24  ;;  %v948_v40 = vadd.f32 %v2686_v33, %v840_v20 }
 0x178   :  { %v859_v35 = vmul.f32 %v2625_v9, %v751_v43  ;;  %v657_v0 = vmul.f32 0.01, %v526_v27  ;;  %v528_v30 = vpop.f32.mrb[79].mxu0  ;;  %1355 = vmatmul.mubr.f32.vlgmr.msra.gmra.mrb[20].mxu1 %v1011_v23  ;;  %v3423_v44 = vmax.f32 %v941_v63, %v965_v36  ;;  %v3991_v63 = vpack.c.bf16 %v3181_v50, %v3176_v25 }
 0x179   :  { %v860_v62 = vmul.f32 %v2631_v13, %v752_v46  ;;  %v658_v1 = vmul.f32 0.01, %v528_v30  ;;  %2109 = vmatpush3.bf16.msra.mxu1 %v3990_v57  ;;  %v3430_v22 = vmax.f32 %v942_v16, %v966_v7  ;;  %v842_v10 = vmul.f32 %v2631_v13, %v734_v19 }
 0x17a   :  { %v967_v11 = vadd.f32 %v2666_v26, %v859_v35  ;;  %v753_v23 = vmax.f32 %v526_v27, %v657_v0  ;;  %2111 = vmatprep.subr.bf16.mxu1 %v3991_v63  ;;  %v735_v61 = vmax.f32 %v3147_v38, %v639_v8  ;;  %v736_v50 = vmax.f32 %v3149_v4, %v640_v42 }
 0x17b   :  { %v968_v49 = vadd.f32 %v2686_v33, %v860_v62  ;;  %v754_v54 = vmax.f32 %v528_v30, %v658_v1  ;;  %v532_v16 = vpop.f32.mrb[80].mxu0  ;;  %1359 = vmatprep.mubr.f32.mxu1 %v3430_v22  ;;  %v3992_v20 = vpack.c.bf16 %v3191_v56, %v3186_v29  ;;  %v949_v19 = vadd.f32 %v2666_v26, %v841_v59 }
 0x17c   :  { %v861_v12 = vmul.f32 %v2625_v9, %v753_v23  ;;  %v659_v52 = vmul.f32 0.01, %v532_v16  ;;  %v534_v24 = vpop.f32.mrb[81].mxu0  ;;  %1360 = vmatmul.mubr.f32.gmra.mrb[22].mxu1 %v3423_v44  ;;  %v3446_v25 = vmax.f32 %v3392_v37, %v967_v11  ;;  %v641_v7 = vmul.f32 0.01, %v3151_v39 }
 0x17d   :  { %v862_v36 = vmul.f32 %v2631_v13, %v754_v54  ;;  %v660_v43 = vmul.f32 0.01, %v534_v24  ;;  %2113 = vmatpush3.bf16.msra.mxu1 %v3992_v20  ;;  %v3454_v38 = vmax.f32 %v3397_v58, %v968_v49  ;;  %v3993_v4 = vpack.c.bf16 %v3201_v14, %v3196_v32 }
 0x17e   :  { %v969_v46 = vadd.f32 %v2666_v26, %v861_v12  ;;  %v755_v37 = vmax.f32 %v532_v16, %v659_v52  ;;  %v950_v27 = vadd.f32 %v2686_v33, %v842_v10  ;;  %v642_v8 = vmul.f32 0.01, %v3153_v6 }
 0x17f   :  { %2115 = vmatprep.subr.bf16.mxu1 %v3993_v4  ;;  %v970_v29 = vadd.f32 %v2686_v33, %v862_v36  ;;  %v756_v56 = vmax.f32 %v534_v24, %v660_v43  ;;  %v538_v58 = vpop.f32.mrb[82].mxu0  ;;  %1364 = vmatprep.mubr.f32.mxu1 %v3454_v38  ;;  %v843_v35 = vmul.f32 %v2625_v9, %v735_v61  ;;  %v643_v23 = vmul.f32 0.01, %v3155_v3 }
 0x180   :  { %v863_v0 = vmul.f32 %v2625_v9, %v755_v37  ;;  %v661_v30 = vmul.f32 0.01, %v538_v58  ;;  %v540_v42 = vpop.f32.mrb[83].mxu0  ;;  %1365 = vmatmul.mubr.f32.gmra.mrb[24].mxu1 %v3446_v25  ;;  %v3470_v32 = vmax.f32 %v3408_v51, %v969_v46  ;;  %v844_v14 = vmul.f32 %v2631_v13, %v736_v50 }
 0x181   :  { %v864_v62 = vmul.f32 %v2631_v13, %v756_v56  ;;  %v662_v1 = vmul.f32 0.01, %v540_v42  ;;  %v3475_v57 = vmax.f32 %v3412_v15, %v970_v29  ;;  %v3994_v59 = vpack.c.bf16 %v3213_v55, %v3208_v2 }
 0x182   :  { %v737_v11 = vmax.f32 %v3151_v39, %v641_v7  ;;  %v971_v63 = vadd.f32 %v2666_v26, %v863_v0  ;;  %v757_v51 = vmax.f32 %v538_v58, %v661_v30  ;;  %v3995_v10 = vpack.c.bf16 %v3223_v60, %v3218_v47 }
 0x183   :  { %2117 = vmatpush3.bf16.msra.mxu1 %v3994_v59  ;;  %v738_v49 = vmax.f32 %v3153_v6, %v642_v8  ;;  %v644_v15 = vmul.f32 0.01, %v3157_v5  ;;  %v972_v54 = vadd.f32 %v2686_v33, %v864_v62  ;;  %v758_v16 = vmax.f32 %v540_v42, %v662_v1  ;;  %v544_v2 = vpop.f32.mrb[84].mxu0  ;;  %1369 = vmatprep.mubr.f32.mxu1 %v3475_v57 }
 0x184   :  { %2119 = vmatprep.subr.bf16.mxu1 %v3995_v10  ;;  %v951_v39 = vadd.f32 %v2666_v26, %v843_v35  ;;  %v865_v55 = vmul.f32 %v2625_v9, %v757_v51  ;;  %v663_v61 = vmul.f32 0.01, %v544_v2  ;;  %v546_v12 = vpop.f32.mrb[85].mxu0  ;;  %1370 = vmatmul.mubr.f32.gmra.mrb[26].mxu1 %v3470_v32  ;;  %v3493_v47 = vmax.f32 %v947_v31, %v971_v63 }
 0x185   :  { %v952_v6 = vadd.f32 %v2686_v33, %v844_v14  ;;  %v866_v60 = vmul.f32 %v2631_v13, %v758_v16  ;;  %v664_v52 = vmul.f32 0.01, %v546_v12  ;;  %v3497_v24 = vmax.f32 %v948_v40, %v972_v54  ;;  %v4001_v16 = vld [vmem:[#allocation30_spill] sm:$0xff] }
 0x186   :  { %v3996_v50 = vpack.c.bf16 %v3240_v18, %v3232_v48  ;;  %v845_v36 = vmul.f32 %v2625_v9, %v737_v11  ;;  %v739_v43 = vmax.f32 %v3155_v3, %v643_v23  ;;  %v973_v20 = vadd.f32 %v2666_v26, %v865_v55 }
 0x187   :  { %v759_v7 = vmax.f32 %v544_v2, %v663_v61  ;;  %v3997_v31 = vpack.c.bf16 %v3250_v45, %v3245_v41  ;;  %v846_v46 = vmul.f32 %v2631_v13, %v738_v49  ;;  %v740_v40 = vmax.f32 %v3157_v5, %v644_v15  ;;  %v550_v18 = vpop.f32.mrb[86].mxu0  ;;  %1374 = vmatprep.mubr.f32.mxu1 %v3497_v24  ;;  %v4002_v2 = vld [vmem:[#allocation29_spill] sm:$0xff]  ;;  %v4004_v61 = vld [vmem:[#allocation26_spill] sm:$0xff] }
 0x188   :  { %2121 = vmatpush3.bf16.msra.mxu1 %v3996_v50  ;;  %v974_v37 = vadd.f32 %v2686_v33, %v866_v60  ;;  %v760_v4 = vmax.f32 %v546_v12, %v664_v52  ;;  %v645_v48 = vmul.f32 0.01, %v3159_v21  ;;  %v665_v8 = vmul.f32 0.01, %v550_v18  ;;  %v552_v29 = vpop.f32.mrb[87].mxu0  ;;  %v4006_v50 = vld [vmem:[#allocation32_spill] sm:$0xff] }
 0x189   :  { %2123 = vmatprep.subr.bf16.mxu1 %v3997_v31  ;;  %v867_v3 = vmul.f32 %v2625_v9, %v759_v7  ;;  %1375 = vmatmul.mubr.f32.gmra.mrb[28].mxu1 %v3493_v47  ;;  %v3515_v45 = vmax.f32 %v949_v19, %v973_v20  ;;  %v646_v41 = vmul.f32 0.01, %v3161_v34  ;;  %v666_v56 = vmul.f32 0.01, %v552_v29  ;;  %v3999_v19 = vld [vmem:[#allocation28_spill] sm:$0xff] }
 0x18a   :  { %v868_v5 = vmul.f32 %v2631_v13, %v760_v4  ;;  %v3519_v58 = vmax.f32 %v950_v27, %v974_v37  ;;  %v3998_v35 = vpack.c.bf16 %v3265_v53, %v3260_v28  ;;  %v953_v0 = vadd.f32 %v2666_v26, %v845_v36 }
 0x18b   :  { %v847_v30 = vmul.f32 %v2625_v9, %v739_v43  ;;  %v975_v42 = vadd.f32 %v2666_v26, %v867_v3  ;;  %v761_v14 = vmax.f32 %v550_v18, %v665_v8  ;;  %v4000_v62 = vpack.c.bf16 %v3281_v17, %v3999_v19  ;;  %v556_v28 = vpop.f32.mrb[88].mxu0  ;;  %v4008_v43 = vld [vmem:[#allocation27_spill] sm:$0xff] }
 0x18c   :  { %2125 = vmatpush3.bf16.msra.mxu1 %v3998_v35  ;;  %v954_v1 = vadd.f32 %v2686_v33, %v846_v46  ;;  %v848_v27 = vmul.f32 %v2631_v13, %v740_v40  ;;  %v976_v59 = vadd.f32 %v2686_v33, %v868_v5  ;;  %v762_v11 = vmax.f32 %v552_v29, %v666_v56  ;;  %v558_v51 = vpop.f32.mrb[89].mxu0  ;;  %v4010_v5 = vld [vmem:[#allocation34_spill] sm:$0xff] }
 0x18d   :  { %2127 = vmatprep.subr.bf16.mxu1 %v4000_v62  ;;  %1379 = vmatprep.mubr.f32.mxu1 %v3519_v58  ;;  %v741_v53 = vmax.f32 %v3159_v21, %v645_v48  ;;  %v869_v23 = vmul.f32 %v2625_v9, %v761_v14  ;;  %v667_v63 = vmul.f32 0.01, %v556_v28  ;;  %v3537_v17 = vmax.f32 %v951_v39, %v975_v42  ;;  %v4005_v39 = vld [vmem:[#allocation33_spill] sm:$0xff] }
 0x18e   :  { %1380 = vmatmul.mubr.f32.gmra.mrb[30].mxu1 %v3515_v45  ;;  %v742_v10 = vmax.f32 %v3161_v34, %v646_v41  ;;  %v870_v49 = vmul.f32 %v2631_v13, %v762_v11  ;;  %v668_v15 = vmul.f32 0.01, %v558_v51  ;;  %v3541_v54 = vmax.f32 %v952_v6, %v976_v59  ;;  %v4009_v41 = vld [vmem:[#allocation36_spill] sm:$0xff]  ;;  %v4014_v62 = vld [vmem:[#allocation37_spill] sm:$0xff]  ;;  %v4016_v11 = vld [vmem:[#allocation35_spill] sm:$0xff] }
 0x18f   :  { %v4003_v55 = vpack.c.bf16 %v4001_v16, %v4002_v2  ;;  %v955_v21 = vadd.f32 %v2666_v26, %v847_v30  ;;  %v647_v12 = vmul.f32 0.01, %v4004_v61  ;;  %v977_v60 = vadd.f32 %v2666_v26, %v869_v23  ;;  %v562_v31 = vpop.f32.mrb[90].mxu0  ;;  %v4012_v30 = vld [vmem:[#allocation31_spill] sm:$0xff] }
 0x190   :  { %v763_v52 = vmax.f32 %v556_v28, %v667_v63  ;;  %v4007_v36 = vpack.c.bf16 %v4005_v39, %v4006_v50  ;;  %v956_v34 = vadd.f32 %v2686_v33, %v848_v27  ;;  %v648_v6 = vmul.f32 0.01, %v4008_v43  ;;  %1384 = vmatprep.mubr.f32.mxu1 %v3541_v54  ;;  %v564_v4 = vpop.f32.mrb[91].mxu0 }
 0x191   :  { %2129 = vmatpush3.bf16.msra.mxu1 %v4003_v55  ;;  %v978_v20 = vadd.f32 %v2686_v33, %v870_v49  ;;  %v764_v7 = vmax.f32 %v558_v51, %v668_v15  ;;  %v849_v46 = vmul.f32 %v2625_v9, %v741_v53  ;;  %v669_v37 = vmul.f32 0.01, %v562_v31 }
 0x192   :  { %2131 = vmatprep.subr.bf16.mxu1 %v4007_v36  ;;  %v871_v40 = vmul.f32 %v2625_v9, %v763_v52  ;;  %1385 = vmatmul.mubr.f32.gmra.mrb[32].mxu1 %v3537_v17  ;;  %v3559_v18 = vmax.f32 %v953_v0, %v977_v60  ;;  %v850_v48 = vmul.f32 %v2631_v13, %v742_v10  ;;  %v670_v8 = vmul.f32 0.01, %v564_v4  ;;  %v4013_v0 = vld [vmem:[#allocation38_spill] sm:$0xff]  ;;  %v4018_v60 = vld [vmem:[#allocation39_spill] sm:$0xff] }
 0x193   :  { %v872_v3 = vmul.f32 %v2631_v13, %v764_v7  ;;  %v3563_v29 = vmax.f32 %v954_v1, %v978_v20  ;;  %v4011_v56 = vpack.c.bf16 %v4009_v41, %v4010_v5  ;;  %v743_v35 = vmax.f32 %v4004_v61, %v647_v12  ;;  %v568_v23 = vpop.f32.mrb[92].mxu0  ;;  %v4017_v12 = vld [vmem:[#allocation40_spill] sm:$0xff] }
 0x194   :  { %v649_v42 = vmul.f32 0.01, %v4012_v30  ;;  %v979_v14 = vadd.f32 %v2666_v26, %v871_v40  ;;  %v765_v19 = vmax.f32 %v562_v31, %v669_v37  ;;  %v4015_v27 = vpack.c.bf16 %v4013_v0, %v4014_v62  ;;  %v570_v49 = vpop.f32.mrb[93].mxu0 }
 0x195   :  { %2133 = vmatpush3.bf16.msra.mxu1 %v4011_v56  ;;  %v744_v59 = vmax.f32 %v4008_v43, %v648_v6  ;;  %v650_v1 = vmul.f32 0.01, %v4016_v11  ;;  %v980_v28 = vadd.f32 %v2686_v33, %v872_v3  ;;  %v766_v53 = vmax.f32 %v564_v4, %v670_v8  ;;  %1389 = vmatprep.mubr.f32.mxu1 %v3563_v29  ;;  %v4021_v6 = vld [vmem:[#allocation41_spill] sm:$0xff] }
 0x196   :  { %2135 = vmatprep.subr.bf16.mxu1 %v4015_v27  ;;  %v957_v63 = vadd.f32 %v2666_v26, %v849_v46  ;;  %v873_v51 = vmul.f32 %v2625_v9, %v765_v19  ;;  %v671_v10 = vmul.f32 0.01, %v568_v23  ;;  %1390 = vmatmul.mubr.f32.gmra.mrb[34].mxu1 %v3559_v18  ;;  %v3581_v15 = vmax.f32 %v955_v21, %v979_v14  ;;  %v4020_v21 = vld [vmem:[#allocation42_spill] sm:$0xff] }
 0x197   :  { %v958_v16 = vadd.f32 %v2686_v33, %v850_v48  ;;  %v874_v2 = vmul.f32 %v2631_v13, %v766_v53  ;;  %v672_v55 = vmul.f32 0.01, %v570_v49  ;;  %v3585_v61 = vmax.f32 %v956_v34, %v980_v28  ;;  %v574_v40 = vpop.f32.mrb[94].mxu0 }
 0x198   :  { %v4019_v52 = vpack.c.bf16 %v4017_v12, %v4018_v60  ;;  %v851_v39 = vmul.f32 %v2625_v9, %v743_v35  ;;  %v745_v50 = vmax.f32 %v4012_v30, %v649_v42  ;;  %v981_v36 = vadd.f32 %v2666_v26, %v873_v51  ;;  %v576_v48 = vpop.f32.mrb[95].mxu0  ;;  %v1150_v51 = vld [vmem:[%s3854_s4 + $0x398] sm:$0xff]  ;;  %v1151_v60 = vld [vmem:[%s3854_s4 + $0x3a0] sm:$0xff] }
 0x199   :  { %v767_v43 = vmax.f32 %v568_v23, %v671_v10  ;;  %v4022_v20 = vpack.c.bf16 %v4020_v21, %v4021_v6  ;;  %v852_v7 = vmul.f32 %v2631_v13, %v744_v59  ;;  %v746_v34 = vmax.f32 %v4016_v11, %v650_v1  ;;  %1394 = vmatprep.mubr.f32.mxu1 %v3585_v61  ;;  %v1131_v23 = vld [vmem:[%s3854_s4 + $0x300] sm:$0xff]  ;;  %v1134_v12 = vld [vmem:[%s3854_s4 + $0x318] sm:$0xff]  ;;  %v1136_v6 = vld [vmem:[%s3854_s4 + $0x328] sm:$0xff] }
 0x19a   :  { %2137 = vmatpush3.bf16.msra.mxu1 %v4019_v52  ;;  %v982_v31 = vadd.f32 %v2686_v33, %v874_v2  ;;  %v768_v46 = vmax.f32 %v570_v49, %v672_v55  ;;  %v673_v4 = vmul.f32 0.01, %v574_v40  ;;  %v3602_v3 = vmax.f32 %v957_v63, %v981_v36  ;;  %v4023_v49 = vld [vmem:[#allocation14_spill] sm:$0xff]  ;;  %v1133_v55 = vld [vmem:[%s3854_s4 + $0x310] sm:$0xff]  ;;  %v1152_v52 = vld [vmem:[%s3854_s4 + $0x3a8] sm:$0xff] }
 0x19b   :  { %2139 = vmatprep.subr.bf16.mxu1 %v4022_v20  ;;  %v875_v37 = vmul.f32 %v2625_v9, %v767_v43  ;;  %1395 = vmatmul.mubr.f32.gmra.mrb[36].mxu1 %v3581_v15  ;;  %v674_v41 = vmul.f32 0.01, %v576_v48  ;;  %v959_v56 = vadd.f32 %v2666_v26, %v851_v39  ;;  %v853_v35 = vmul.f32 %v2625_v9, %v745_v50  ;;  %v4024_v39 = vld [vmem:[#allocation13_spill] sm:$0xff]  ;;  %v4025_v50 = vld [vmem:[#allocation16_spill] sm:$0xff]  ;;  %v1135_v21 = vld [vmem:[%s3854_s4 + $0x320] sm:$0xff] }
 0x19c   :  { %v876_v8 = vmul.f32 %v2631_v13, %v768_v46  ;;  %v3605_v5 = vmax.f32 %v958_v16, %v982_v31  ;;  %v769_v42 = vmax.f32 %v574_v40, %v673_v4  ;;  %v960_v14 = vadd.f32 %v2686_v33, %v852_v7  ;;  %v1153_v20 = vld [vmem:[%s3854_s4 + $0x3b0] sm:$0xff]  ;;  %v1154_v7 = vld [vmem:[%s3854_s4 + $0x3b8] sm:$0xff]  ;;  %v4027_v31 = vld [vmem:[#allocation18_spill] sm:$0xff] }
 0x19d   :  { %v983_v30 = vadd.f32 %v2666_v26, %v875_v37  ;;  %v854_v19 = vmul.f32 %v2631_v13, %v746_v34  ;;  %v770_v62 = vmax.f32 %v576_v48, %v674_v41  ;;  %v3622_v28 = vadd.f32 %v2666_v26, %v853_v35  ;;  %v4026_v34 = vld [vmem:[#allocation15_spill] sm:$0xff]  ;;  %v1137_v37 = vld [vmem:[%s3854_s4 + $0x330] sm:$0xff]  ;;  %v1138_v4 = vld [vmem:[%s3854_s4 + $0x338] sm:$0xff] }
 0x19e   :  { %v984_v0 = vadd.f32 %v2686_v33, %v876_v8  ;;  %1399 = vmatprep.mubr.f32.mxu1 %v3605_v5  ;;  %v877_v27 = vmul.f32 %v2625_v9, %v769_v42  ;;  %v1132_v9 = vld [vmem:[%s3854_s4 + $0x308] sm:$0xff]  ;;  %v2144_v36 = vpack.c.bf16 %v1134_v12, %v1133_v55  ;;  %v2146_v43 = vpack.c.bf16 %v1152_v52, %v1151_v60  ;;  %v1155_v48 = vld [vmem:[%s3854_s4 + $0x3c0] sm:$0xff]  ;;  %v4028_v41 = vld [vmem:[#allocation17_spill] sm:$0xff] }
 0x19f   :  { %1400 = vmatmul.mubr.f32.gmra.mrb[38].mxu1 %v3602_v3  ;;  %v3616_v59 = vmax.f32 %v959_v56, %v983_v30  ;;  %v878_v11 = vmul.f32 %v2631_v13, %v770_v62  ;;  %v3634_v63 = vadd.f32 %v2686_v33, %v854_v19  ;;  %v2140_v16 = vpack.c.bf16 %v1132_v9, %v1131_v23  ;;  %v1156_v8 = vld [vmem:[%s3854_s4 + $0x3c8] sm:$0xff]  ;;  %v4029_v56 = vld [vmem:[#allocation20_spill] sm:$0xff]  ;;  %v1139_v42 = vld [vmem:[%s3854_s4 + $0x340] sm:$0xff] }
 0x1a0   :  { %v3619_v1 = vmax.f32 %v960_v14, %v984_v0  ;;  %v3625_v53 = vadd.f32 %v2666_v26, %v877_v27  ;;  %v1149_v26 = vld [vmem:[%s3854_s4 + $0x390] sm:$0xff]  ;;  %v2148_v46 = vpack.c.bf16 %v1136_v6, %v1135_v21  ;;  %v2150_v40 = vpack.c.bf16 %v1154_v7, %v1153_v20  ;;  %v1140_v14 = vld [vmem:[%s3854_s4 + $0x348] sm:$0xff]  ;;  %v1158_v0 = vld [vmem:[%s3854_s4 + $0x3d8] sm:$0xff] }
 0x1a1   :  { %v3637_v13 = vadd.f32 %v2686_v33, %v878_v11  ;;  %v2142_v2 = vpack.c.bf16 %v1150_v51, %v1149_v26  ;;  %v2152_v35 = vpack.c.bf16 %v1138_v4, %v1137_v37  ;;  %v2154_v30 = vpack.c.bf16 %v1156_v8, %v1155_v48  ;;  %v1157_v19 = vld [vmem:[%s3854_s4 + $0x3d0] sm:$0xff]  ;;  %v4030_v62 = vld [vmem:[#allocation19_spill] sm:$0xff]  ;;  %v4031_v27 = vld [vmem:[#allocation22_spill] sm:$0xff] }
 0x1a2   :  { %1404 = vmatprep.mubr.f32.mxu1 %v3619_v1  ;;  %v1033_v10 = vmax.f32 %v3622_v28, %v3625_v53  ;;  %v2156_v11 = vpack.c.bf16 %v1140_v14, %v1139_v42  ;;  %v2158_v23 = vpack.c.bf16 %v1158_v0, %v1157_v19  ;;  %v1141_v9 = vld [vmem:[%s3854_s4 + $0x350] sm:$0xff]  ;;  %v1142_v26 = vld [vmem:[%s3854_s4 + $0x358] sm:$0xff]  ;;  %v1159_v51 = vld [vmem:[%s3854_s4 + $0x3e0] sm:$0xff] }
 0x1a3   :  { %1405 = vmatmul.mubr.f32.gmra.mrb[40].mxu1 %v3616_v59  ;;  %v1034_v33 = vmax.f32 %v3634_v63, %v3637_v13  ;;  %v2160_v55 = vpack.c.bf16 %v1142_v26, %v1141_v9  ;;  %v1143_v60 = vld [vmem:[%s3854_s4 + $0x360] sm:$0xff]  ;;  %v1144_v52 = vld [vmem:[%s3854_s4 + $0x368] sm:$0xff]  ;;  %v1145_v20 = vld [vmem:[%s3854_s4 + $0x370] sm:$0xff] }
 0x1a4   :  { %1474 = vmatprep.mubr.f32.mxu1 %v4023_v49  ;;  %v1160_v49 = vld [vmem:[%s3854_s4 + $0x3e8] sm:$0xff]  ;;  %v2164_v21 = vpack.c.bf16 %v1144_v52, %v1143_v60  ;;  %v1146_v7 = vld [vmem:[%s3854_s4 + $0x378] sm:$0xff]  ;;  %v4039_v37 = vld [vmem:[#allocation8_spill] sm:$0xff] }
 0x1a5   :  { %v2162_v12 = vpack.c.bf16 %v1160_v49, %v1159_v51  ;;  %v4040_v4 = vld [vmem:[#allocation9_spill] sm:$0xff]  ;;  %v4041_v48 = vld [vmem:[#allocation11_spill] sm:$0xff]  ;;  %v4042_v8 = vld [vmem:[#allocation4_spill] sm:$0xff] }
 0x1a6   :  { %v4047_v42 = vld [vmem:[#allocation5_spill] sm:$0xff]  ;;  %v1775_v26 = vld [vmem:[%s3857_s5] ss:$0 sm:$0xff] }
 0x1a7   :  { %1475 = vmatmul.mubr.f32.vlgmr.msra.gmra.mrb[42].mxu1 %v4024_v39  ;;  %v1161_v39 = vld [vmem:[%s3854_s4 + $0x3f0] sm:$0xff] }
 0x1a8   :  { %2141 = vmatpush3.bf16.msra.mxu1 %v2140_v16  ;;  %1479 = vmatprep.mubr.f32.mxu1 %v4025_v50  ;;  %v4032_v16 = vld [vmem:[#allocation21_spill] sm:$0xff] }
 0x1a9   :  { %2143 = vmatprep.subr.bf16.mxu1 %v2142_v2  ;;  %v4033_v2 = vld [vmem:[#allocation24_spill] sm:$0xff]  ;;  %v1162_v50 = vld [vmem:[%s3854_s4 + $0x3f8] sm:$0xff] }
 0x1aa   :  { %v2166_v6 = vpack.c.bf16 %v1162_v50, %v1161_v39 }
 0x1ab   :  { %1480 = vmatmul.mubr.f32.gmra.mrb[44].mxu1 %v4026_v34  ;;  %v4036_v34 = vld [vmem:[#allocation2_spill] sm:$0xff] }
 0x1ac   :  { %1484 = vmatprep.mubr.f32.mxu1 %v4027_v31  ;;  %2145 = vmatpush3.bf16.msra.mxu1 %v2144_v36  ;;  %v4034_v36 = vld [vmem:[#allocation23_spill] sm:$0xff] }
 0x1ad   :  { %2147 = vmatprep.subr.bf16.mxu1 %v2146_v43  ;;  %v4035_v43 = vld [vmem:[#allocation7_spill] sm:$0xff] }
 0x1ae   :  { %v4037_v31 = vld [vmem:[#allocation3_spill] sm:$0xff] }
 0x1af   :  { %1485 = vmatmul.mubr.f32.gmra.mrb[46].mxu1 %v4028_v41  ;;  %v4043_v41 = vld [vmem:[#allocation12_spill] sm:$0xff] }
 0x1b0   :  { %1489 = vmatprep.mubr.f32.mxu1 %v4029_v56  ;;  %2149 = vmatpush3.bf16.msra.mxu1 %v2148_v46  ;;  %v2168_v46 = vpack.c.bf16 %v1146_v7, %v1145_v20  ;;  %v4044_v56 = vld [vmem:[#allocation25_spill] sm:$0xff] }
 0x1b1   :  { %2151 = vmatprep.subr.bf16.mxu1 %v2150_v40  ;;  %v4038_v40 = vld [vmem:[#allocation6_spill] sm:$0xff] }
 0x1b3   :  { %1490 = vmatmul.mubr.f32.gmra.mrb[48].mxu1 %v4030_v62 }
 0x1b4   :  { %1494 = vmatprep.mubr.f32.mxu1 %v4031_v27  ;;  %2153 = vmatpush3.bf16.msra.mxu1 %v2152_v35  ;;  %v4045_v35 = vmax.f32 %v4043_v41, %v4044_v56 }
 0x1b5   :  { %2155 = vmatprep.subr.bf16.mxu1 %v2154_v30  ;;  %v4046_v30 = vld [vmem:[#allocation10_spill] sm:$0xff] }
 0x1b6   :  { %v4048_v14 = vmax.f32 %v4046_v30, %v4047_v42 }
 0x1b7   :  { %1495 = vmatmul.mubr.f32.gmra.mrb[50].mxu1 %v4032_v16 }
 0x1b8   :  { %1499 = vmatprep.mubr.f32.mxu1 %v4033_v2  ;;  %2157 = vmatpush3.bf16.msra.mxu1 %v2156_v11 }
 0x1b9   :  { %2159 = vmatprep.subr.bf16.mxu1 %v2158_v23 }
 0x1bb   :  { %1500 = vmatmul.mubr.f32.gmra.mrb[52].mxu1 %v4034_v36 }
 0x1bc   :  { %1504 = vmatprep.mubr.f32.mxu1 %v4035_v43  ;;  %2161 = vmatpush3.bf16.msra.mxu1 %v2160_v55 }
 0x1bd   :  { %2163 = vmatprep.subr.bf16.mxu1 %v2162_v12 }
 0x1bf   :  { %1505 = vmatmul.mubr.f32.gmra.mrb[54].mxu1 %v4036_v34 }
 0x1c0   :  { %1509 = vmatprep.mubr.f32.mxu1 %v4037_v31  ;;  %2165 = vmatpush3.bf16.msra.mxu1 %v2164_v21 }
 0x1c1   :  { %2167 = vmatprep.subr.bf16.mxu1 %v2166_v6 }
 0x1c3   :  { %1510 = vmatmul.mubr.f32.gmra.mrb[56].mxu1 %v4038_v40 }
 0x1c4   :  { %1514 = vmatprep.mubr.f32.mxu1 %v4039_v37  ;;  %2169 = vmatpush3.bf16.msra.mxu1 %v2168_v46 }
 0x1c7   :  { %1515 = vmatmul.mubr.f32.gmra.mrb[58].mxu1 %v4040_v4 }
 0x1c8   :  { %1519 = vmatprep.mubr.f32.mxu1 %v4041_v48 }
 0x1cb   :  { %1520 = vmatmul.mubr.f32.gmra.mrb[60].mxu1 %v4042_v8 }
 0x1cc   :  { %1524 = vmatprep.mubr.f32.mxu1 %v4045_v35 }
 0x1cf   :  { %1525 = vmatmul.mubr.f32.gmra.mrb[62].mxu1 %v4048_v14 }
 0x1d0   :  { %1594 = vmatprep.mubr.f32.mxu1 %v3430_v22 }
 0x1d3   :  { %1595 = vmatmul.mubr.f32.vlgmr.msra.gmra.mrb[64].mxu1 %v3423_v44 }
 0x1d4   :  { %1599 = vmatprep.mubr.f32.mxu1 %v3454_v38 }
 0x1d7   :  { %1600 = vmatmul.mubr.f32.gmra.mrb[66].mxu1 %v3446_v25 }
 0x1d8   :  { %1604 = vmatprep.mubr.f32.mxu1 %v3475_v57 }
 0x1db   :  { %1605 = vmatmul.mubr.f32.gmra.mrb[68].mxu1 %v3470_v32 }
 0x1dc   :  { %1609 = vmatprep.mubr.f32.mxu1 %v3497_v24 }
 0x1df   :  { %1610 = vmatmul.mubr.f32.gmra.mrb[70].mxu1 %v3493_v47 }
 0x1e0   :  { %1614 = vmatprep.mubr.f32.mxu1 %v3519_v58 }
 0x1e3   :  { %1615 = vmatmul.mubr.f32.gmra.mrb[72].mxu1 %v3515_v45 }
 0x1e4   :  { %1619 = vmatprep.mubr.f32.mxu1 %v3541_v54 }
 0x1e7   :  { %1620 = vmatmul.mubr.f32.gmra.mrb[74].mxu1 %v3537_v17 }
 0x1e8   :  { %1624 = vmatprep.mubr.f32.mxu1 %v3563_v29 }
 0x1eb   :  { %1625 = vmatmul.mubr.f32.gmra.mrb[76].mxu1 %v3559_v18  ;;  %v1810_v44 = vpop.f32.mrb[96].mxu0 }
 0x1ec   :  { %1629 = vmatprep.mubr.f32.mxu1 %v3585_v61  ;;  %v1811_v22 = vpop.f32.mrb[97].mxu0 }
 0x1ed   :  { %v1812_v25 = vadd.f32 %v1811_v22, %v1810_v44 }
 0x1ef   :  { %1630 = vmatmul.mubr.f32.gmra.mrb[78].mxu1 %v3581_v15  ;;  %v1813_v38 = vpop.f32.mrb[0].mxu1  ;;  %v1237_v16 = vadd.f32 %v1812_v25, %v1775_v26 }
 0x1f0   :  { %1634 = vmatprep.mubr.f32.mxu1 %v3605_v5  ;;  %v1814_v32 = vpop.f32.mrb[1].mxu1 }
 0x1f1   :  { %v1815_v57 = vadd.f32 %v1814_v32, %v1813_v38 }
 0x1f3   :  { %1635 = vmatmul.mubr.f32.gmra.mrb[80].mxu1 %v3602_v3  ;;  %v1242_v52 = vadd.f32 %v1815_v57, %v1775_v26 }
 0x1f4   :  { %1639 = vmatprep.mubr.f32.mxu1 %v3619_v1  ;;  %v1816_v47 = vpop.f32.mrb[2].mxu1 }
 0x1f5   :  { %v1817_v24 = vpop.f32.mrb[3].mxu1 }
 0x1f6   :  { %v1818_v45 = vadd.f32 %v1817_v24, %v1816_v47 }
 0x1f7   :  { %1640 = vmatmul.mubr.f32.gmra.mrb[82].mxu1 %v3616_v59 }
 0x1f8   :  { %1644 = vmatprep.mubr.f32.mxu1 %v1034_v33  ;;  %v1819_v58 = vpop.f32.mrb[4].mxu1  ;;  %v1247_v21 = vadd.f32 %v1818_v45, %v1775_v26 }
 0x1f9   :  { %v1820_v17 = vpop.f32.mrb[5].mxu1 }
 0x1fa   :  { %v1821_v54 = vadd.f32 %v1820_v17, %v1819_v58 }
 0x1fb   :  { %1645 = vmatmul.mubr.f32.gmra.mrb[84].mxu1 %v1033_v10 }
 0x1fc   :  { %v1822_v18 = vpop.f32.mrb[6].mxu1  ;;  %v1252_v31 = vadd.f32 %v1821_v54, %v1775_v26 }
 0x1fd   :  { %v1823_v29 = vpop.f32.mrb[7].mxu1 }
 0x1fe   :  { %v1824_v15 = vadd.f32 %v1823_v29, %v1822_v18 }
 0x200   :  { %v1257_v48 = vadd.f32 %v1824_v15, %v1775_v26 }
 0x201   :  { %v1825_v61 = vpop.f32.mrb[8].mxu1 }
 0x202   :  { %v1826_v3 = vpop.f32.mrb[9].mxu1 }
 0x203   :  { %v1827_v5 = vadd.f32 %v1826_v3, %v1825_v61 }
 0x205   :  { %v1262_v30 = vadd.f32 %v1827_v5, %v1775_v26 }
 0x206   :  { %v1828_v1 = vpop.f32.mrb[10].mxu1 }
 0x207   :  { %v1829_v59 = vpop.f32.mrb[11].mxu1 }
 0x208   :  { %v1830_v19 = vadd.f32 %v1829_v59, %v1828_v1 }
 0x20a   :  { %v1831_v0 = vpop.f32.mrb[12].mxu1  ;;  %v1267_v25 = vadd.f32 %v1830_v19, %v1775_v26 }
 0x20b   :  { %v1832_v62 = vpop.f32.mrb[13].mxu1 }
 0x20c   :  { %v1833_v63 = vadd.f32 %v1832_v62, %v1831_v0 }
 0x20e   :  { %v1272_v24 = vadd.f32 %v1833_v63, %v1775_v26 }
 0x20f   :  { %v1834_v13 = vpop.f32.mrb[14].mxu1 }
 0x210   :  { %v1835_v33 = vpop.f32.mrb[15].mxu1 }
 0x211   :  { %v1836_v27 = vadd.f32 %v1835_v33, %v1834_v13 }
 0x213   :  { %v1837_v11 = vpop.f32.mrb[16].mxu1  ;;  %v1277_v18 = vadd.f32 %v1836_v27, %v1775_v26 }
 0x214   :  { %v1838_v23 = vpop.f32.mrb[17].mxu1 }
 0x215   :  { %v1839_v28 = vadd.f32 %v1838_v23, %v1837_v11 }
 0x217   :  { %v1840_v53 = vpop.f32.mrb[18].mxu1  ;;  %v1282_v5 = vadd.f32 %v1839_v28, %v1775_v26 }
 0x218   :  { %v1841_v10 = vpop.f32.mrb[19].mxu1 }
 0x219   :  { %v1842_v9 = vadd.f32 %v1841_v10, %v1840_v53 }
 0x21b   :  { %v1287_v19 = vadd.f32 %v1842_v9, %v1775_v26 }
 0x24b   :  { %v1875_v51 = vpop.f32.mrb[20].mxu1 }
 0x24c   :  { %v1876_v49 = vpop.f32.mrb[21].mxu1 }
 0x24d   :  { %v1877_v2 = vadd.f32 %v1876_v49, %v1875_v51 }
 0x24f   :  { %v1357_v55 = vadd.f32 %v1877_v2, %v1237_v16  ;;  %v1878_v12 = vpop.f32.mrb[22].mxu1 }
 0x250   :  { %v1879_v60 = vpop.f32.mrb[23].mxu1 }
 0x251   :  { %v1880_v39 = vadd.f32 %v1879_v60, %v1878_v12 }
 0x253   :  { %v1362_v50 = vadd.f32 %v1880_v39, %v1242_v52  ;;  %v1881_v36 = vpop.f32.mrb[24].mxu1 }
 0x254   :  { %v1882_v43 = vpop.f32.mrb[25].mxu1 }
 0x255   :  { %v1883_v6 = vadd.f32 %v1882_v43, %v1881_v36 }
 0x257   :  { %v1367_v20 = vadd.f32 %v1883_v6, %v1247_v21  ;;  %v1884_v7 = vpop.f32.mrb[26].mxu1 }
 0x258   :  { %v1885_v34 = vpop.f32.mrb[27].mxu1 }
 0x259   :  { %v1886_v46 = vadd.f32 %v1885_v34, %v1884_v7 }
 0x25b   :  { %v1372_v40 = vadd.f32 %v1886_v46, %v1252_v31 }
 0x25c   :  { %v1887_v37 = vpop.f32.mrb[28].mxu1 }
 0x25d   :  { %v1888_v4 = vpop.f32.mrb[29].mxu1 }
 0x25e   :  { %v1889_v8 = vadd.f32 %v1888_v4, %v1887_v37 }
 0x260   :  { %v1377_v41 = vadd.f32 %v1889_v8, %v1257_v48 }
 0x261   :  { %v1890_v56 = vpop.f32.mrb[30].mxu1 }
 0x262   :  { %v1891_v35 = vpop.f32.mrb[31].mxu1 }
 0x263   :  { %v1892_v42 = vadd.f32 %v1891_v35, %v1890_v56 }
 0x265   :  { %v1382_v14 = vadd.f32 %v1892_v42, %v1262_v30  ;;  %v1893_v44 = vpop.f32.mrb[32].mxu1 }
 0x266   :  { %v1894_v22 = vpop.f32.mrb[33].mxu1 }
 0x267   :  { %v1895_v38 = vadd.f32 %v1894_v22, %v1893_v44 }
 0x269   :  { %v1387_v32 = vadd.f32 %v1895_v38, %v1267_v25  ;;  %v1896_v57 = vpop.f32.mrb[34].mxu1 }
 0x26a   :  { %v1897_v47 = vpop.f32.mrb[35].mxu1 }
 0x26b   :  { %v1898_v45 = vadd.f32 %v1897_v47, %v1896_v57 }
 0x26d   :  { %v1392_v58 = vadd.f32 %v1898_v45, %v1272_v24 }
 0x26e   :  { %v1899_v17 = vpop.f32.mrb[36].mxu1 }
 0x26f   :  { %v1900_v54 = vpop.f32.mrb[37].mxu1 }
 0x270   :  { %v1901_v29 = vadd.f32 %v1900_v54, %v1899_v17 }
 0x272   :  { %v1397_v15 = vadd.f32 %v1901_v29, %v1277_v18  ;;  %v1902_v61 = vpop.f32.mrb[38].mxu1 }
 0x273   :  { %v1903_v3 = vpop.f32.mrb[39].mxu1 }
 0x274   :  { %v1904_v1 = vadd.f32 %v1903_v3, %v1902_v61  ;;  %v3801_v3 = vld [vmem:[%s3858_s6] ss:$0 sm:$0xff] }
 0x276   :  { %v1402_v59 = vadd.f32 %v1904_v1, %v1282_v5  ;;  %v1905_v0 = vpop.f32.mrb[40].mxu1 }
 0x277   :  { %v1906_v62 = vpop.f32.mrb[41].mxu1 }
 0x278   :  { %v1907_v13 = vadd.f32 %v1906_v62, %v1905_v0 }
 0x27a   :  { %v1407_v33 = vadd.f32 %v1907_v13, %v1287_v19  ;;  %v1940_v11 = vpop.f32.mrb[42].mxu1 }
 0x27b   :  { %v1941_v23 = vpop.f32.mrb[43].mxu1 }
 0x27c   :  { %v1942_v63 = vadd.f32 %v1941_v23, %v1940_v11 }
 0x27e   :  { %v1477_v53 = vadd.f32 %v1942_v63, %v1357_v55  ;;  %v1943_v10 = vpop.f32.mrb[44].mxu1 }
 0x27f   :  { %v1944_v51 = vpop.f32.mrb[45].mxu1 }
 0x280   :  { %v1945_v49 = vadd.f32 %v1944_v51, %v1943_v10 }
 0x282   :  { %v1482_v27 = vadd.f32 %v1945_v49, %v1362_v50  ;;  %v1946_v16 = vpop.f32.mrb[46].mxu1 }
 0x283   :  { %v1947_v2 = vpop.f32.mrb[47].mxu1 }
 0x284   :  { %v1948_v12 = vadd.f32 %v1947_v2, %v1946_v16 }
 0x286   :  { %v1487_v60 = vadd.f32 %v1948_v12, %v1367_v20  ;;  %v1949_v28 = vpop.f32.mrb[48].mxu1 }
 0x287   :  { %v1950_v52 = vpop.f32.mrb[49].mxu1 }
 0x288   :  { %v1951_v39 = vadd.f32 %v1950_v52, %v1949_v28 }
 0x28a   :  { %v1492_v36 = vadd.f32 %v1951_v39, %v1372_v40  ;;  %v1952_v43 = vpop.f32.mrb[50].mxu1 }
 0x28b   :  { %v1953_v9 = vpop.f32.mrb[51].mxu1 }
 0x28c   :  { %v1954_v26 = vadd.f32 %v1953_v9, %v1952_v43 }
 0x28e   :  { %v3784_v21 = vadd.f32 %v1954_v26, %v1377_v41  ;;  %v1955_v6 = vpop.f32.mrb[52].mxu1 }
 0x28f   :  { %v1956_v7 = vpop.f32.mrb[53].mxu1 }
 0x290   :  { %v1957_v55 = vadd.f32 %v1956_v7, %v1955_v6 }
 0x292   :  { %v3786_v34 = vadd.f32 %v1957_v55, %v1382_v14  ;;  %v1958_v31 = vpop.f32.mrb[54].mxu1 }
 0x293   :  { %v1959_v50 = vpop.f32.mrb[55].mxu1 }
 0x294   :  { %v1960_v46 = vadd.f32 %v1959_v50, %v1958_v31 }
 0x296   :  { %v3788_v37 = vadd.f32 %v1960_v46, %v1387_v32  ;;  %v1961_v20 = vpop.f32.mrb[56].mxu1 }
 0x297   :  { %v1962_v4 = vpop.f32.mrb[57].mxu1 }
 0x298   :  { %v1963_v48 = vadd.f32 %v1962_v4, %v1961_v20 }
 0x29a   :  { %v3790_v8 = vadd.f32 %v1963_v48, %v1392_v58  ;;  %v1964_v40 = vpop.f32.mrb[58].mxu1 }
 0x29b   :  { %v1965_v56 = vpop.f32.mrb[59].mxu1 }
 0x29c   :  { %v1966_v35 = vadd.f32 %v1965_v56, %v1964_v40 }
 0x29e   :  { %v3792_v41 = vadd.f32 %v1966_v35, %v1397_v15  ;;  %v1967_v30 = vpop.f32.mrb[60].mxu1 }
 0x29f   :  { %v1968_v42 = vpop.f32.mrb[61].mxu1 }
 0x2a0   :  { %v1969_v44 = vadd.f32 %v1968_v42, %v1967_v30 }
 0x2a2   :  { %v3794_v14 = vadd.f32 %v1969_v44, %v1402_v59  ;;  %v1970_v22 = vpop.f32.mrb[62].mxu1 }
 0x2a3   :  { %v1971_v25 = vpop.f32.mrb[63].mxu1 }
 0x2a4   :  { %v1972_v38 = vadd.f32 %v1971_v25, %v1970_v22 }
 0x2a6   :  { %v3796_v32 = vadd.f32 %v1972_v38, %v1407_v33  ;;  %v2005_v57 = vpop.f32.mrb[64].mxu1  ;;  %v3807_v33 = vld [vmem:[%s3859_s7] ss:$0 sm:$0xff] }
 0x2a7   :  { %v2006_v47 = vpop.f32.mrb[65].mxu1 }
 0x2a8   :  { %v2007_v24 = vadd.f32 %v2006_v47, %v2005_v57 }
 0x2aa   :  { %v1597_v45 = vadd.f32 %v2007_v24, %v1477_v53  ;;  %v2008_v58 = vpop.f32.mrb[66].mxu1 }
 0x2ab   :  { %v2009_v17 = vpop.f32.mrb[67].mxu1 }
 0x2ac   :  { %v1650_v54 = vmul.f32 0.01, %v1597_v45  ;;  %v2010_v18 = vadd.f32 %v2009_v17, %v2008_v58 }
 0x2ae   :  { %v1661_v29 = vmax.f32 %v1597_v45, %v1650_v54  ;;  %v1602_v15 = vadd.f32 %v2010_v18, %v1482_v27  ;;  %v2011_v61 = vpop.f32.mrb[68].mxu1 }
 0x2af   :  { %v2012_v5 = vpop.f32.mrb[69].mxu1 }
 0x2b0   :  { %v1651_v1 = vmul.f32 0.01, %v1602_v15  ;;  %v2013_v59 = vadd.f32 %v2012_v5, %v2011_v61  ;;  %v1679_v0 = vmul.f32 %v3801_v3, %v1661_v29 }
 0x2b2   :  { %v1662_v62 = vmax.f32 %v1602_v15, %v1651_v1  ;;  %v1607_v19 = vadd.f32 %v2013_v59, %v1487_v60  ;;  %v2014_v13 = vpop.f32.mrb[70].mxu1  ;;  %v1697_v10 = vadd.f32 %v3807_v33, %v1679_v0 }
 0x2b3   :  { %v2015_v11 = vpop.f32.mrb[71].mxu1 }
 0x2b4   :  { %v1680_v23 = vmul.f32 %v3801_v3, %v1662_v62  ;;  %v1652_v63 = vmul.f32 0.01, %v1607_v19  ;;  %v2016_v53 = vadd.f32 %v2015_v11, %v2014_v13 }
 0x2b6   :  { %v1698_v51 = vadd.f32 %v3807_v33, %v1680_v23  ;;  %v1663_v49 = vmax.f32 %v1607_v19, %v1652_v63  ;;  %v1612_v27 = vadd.f32 %v2016_v53, %v1492_v36  ;;  %v2017_v16 = vpop.f32.mrb[72].mxu1 }
 0x2b7   :  { %v2018_v2 = vpop.f32.mrb[73].mxu1 }
 0x2b8   :  { %v1708_v12 = vmax.f32 %v1697_v10, %v1698_v51  ;;  %v1681_v60 = vmul.f32 %v3801_v3, %v1663_v49  ;;  %v1653_v28 = vmul.f32 0.01, %v1612_v27  ;;  %v2019_v52 = vadd.f32 %v2018_v2, %v2017_v16 }
 0x2ba   :  { %v1699_v39 = vadd.f32 %v3807_v33, %v1681_v60  ;;  %v1664_v43 = vmax.f32 %v1612_v27, %v1653_v28  ;;  %v1617_v9 = vadd.f32 %v2019_v52, %v3784_v21  ;;  %v2020_v26 = vpop.f32.mrb[74].mxu1 }
 0x2bb   :  { %v2021_v6 = vpop.f32.mrb[75].mxu1 }
 0x2bc   :  { %v1709_v7 = vmax.f32 %v1708_v12, %v1699_v39  ;;  %v1682_v55 = vmul.f32 %v3801_v3, %v1664_v43  ;;  %v1654_v31 = vmul.f32 0.01, %v1617_v9  ;;  %v2022_v50 = vadd.f32 %v2021_v6, %v2020_v26 }
 0x2be   :  { %1710 = vst [vmem:[%s3860_s8] sm:$0xff] %v1709_v7  ;;  %v1700_v36 = vadd.f32 %v3807_v33, %v1682_v55  ;;  %v1665_v46 = vmax.f32 %v1617_v9, %v1654_v31  ;;  %v1622_v20 = vadd.f32 %v2022_v50, %v3786_v34  ;;  %v2023_v4 = vpop.f32.mrb[76].mxu1 }
 0x2bf   :  { %v2024_v48 = vpop.f32.mrb[77].mxu1 }
 0x2c0   :  { %v1711_v40 = vmax.f32 %v1699_v39, %v1700_v36  ;;  %v1683_v21 = vmul.f32 %v3801_v3, %v1665_v46  ;;  %v1655_v56 = vmul.f32 0.01, %v1622_v20  ;;  %v2025_v35 = vadd.f32 %v2024_v48, %v2023_v4 }
 0x2c2   :  { %v1701_v30 = vadd.f32 %v3807_v33, %v1683_v21  ;;  %v1666_v42 = vmax.f32 %v1622_v20, %v1655_v56  ;;  %v1627_v44 = vadd.f32 %v2025_v35, %v3788_v37  ;;  %v2026_v22 = vpop.f32.mrb[78].mxu1 }
 0x2c3   :  { %v2027_v25 = vpop.f32.mrb[79].mxu1 }
 0x2c4   :  { %v1712_v38 = vmax.f32 %v1711_v40, %v1701_v30  ;;  %v1684_v57 = vmul.f32 %v3801_v3, %v1666_v42  ;;  %v1656_v47 = vmul.f32 0.01, %v1627_v44  ;;  %v2028_v24 = vadd.f32 %v2027_v25, %v2026_v22 }
 0x2c6   :  { %1713 = vst [vmem:[%s3860_s8 + $0x8] sm:$0xff] %v1712_v38  ;;  %v1702_v34 = vadd.f32 %v3807_v33, %v1684_v57  ;;  %v1667_v45 = vmax.f32 %v1627_v44, %v1656_v47  ;;  %v1632_v58 = vadd.f32 %v2028_v24, %v3790_v8  ;;  %v2029_v17 = vpop.f32.mrb[80].mxu1 }
 0x2c7   :  { %v2030_v54 = vpop.f32.mrb[81].mxu1 }
 0x2c8   :  { %v1714_v18 = vmax.f32 %v1701_v30, %v1702_v34  ;;  %v1685_v37 = vmul.f32 %v3801_v3, %v1667_v45  ;;  %v1657_v29 = vmul.f32 0.01, %v1632_v58  ;;  %v2031_v15 = vadd.f32 %v2030_v54, %v2029_v17 }
 0x2ca   :  { %v1703_v61 = vadd.f32 %v3807_v33, %v1685_v37  ;;  %v1668_v5 = vmax.f32 %v1632_v58, %v1657_v29  ;;  %v1637_v1 = vadd.f32 %v2031_v15, %v3792_v41  ;;  %v2032_v59 = vpop.f32.mrb[82].mxu1 }
 0x2cb   :  { %v2033_v0 = vpop.f32.mrb[83].mxu1 }
 0x2cc   :  { %v1715_v62 = vmax.f32 %v1714_v18, %v1703_v61  ;;  %v1686_v19 = vmul.f32 %v3801_v3, %v1668_v5  ;;  %v1658_v13 = vmul.f32 0.01, %v1637_v1  ;;  %v2034_v11 = vadd.f32 %v2033_v0, %v2032_v59 }
 0x2ce   :  { %1716 = vst [vmem:[%s3860_s8 + $0x10] sm:$0xff] %v1715_v62  ;;  %v1704_v8 = vadd.f32 %v3807_v33, %v1686_v19  ;;  %v1669_v23 = vmax.f32 %v1637_v1, %v1658_v13  ;;  %v1642_v63 = vadd.f32 %v2034_v11, %v3794_v14  ;;  %v2035_v53 = vpop.f32.mrb[84].mxu1 }
 0x2cf   :  { %v2036_v10 = vpop.f32.mrb[85].mxu1 }
 0x2d0   :  { %v1717_v51 = vmax.f32 %v1703_v61, %v1704_v8  ;;  %v1687_v41 = vmul.f32 %v3801_v3, %v1669_v23  ;;  %v1659_v49 = vmul.f32 0.01, %v1642_v63  ;;  %v2037_v27 = vadd.f32 %v2036_v10, %v2035_v53 }
 0x2d2   :  { %v1705_v16 = vadd.f32 %v3807_v33, %v1687_v41  ;;  %v1670_v2 = vmax.f32 %v1642_v63, %v1659_v49  ;;  %v1647_v12 = vadd.f32 %v2037_v27, %v3796_v32 }
 0x2d4   :  { %v1718_v60 = vmax.f32 %v1717_v51, %v1705_v16  ;;  %v1688_v28 = vmul.f32 %v3801_v3, %v1670_v2  ;;  %v1660_v52 = vmul.f32 0.01, %v1647_v12 }
 0x2d6   :  { %1719 = vst [vmem:[%s3860_s8 + $0x18] sm:$0xff] %v1718_v60  ;;  %v1706_v14 = vadd.f32 %v3807_v33, %v1688_v28  ;;  %v1671_v39 = vmax.f32 %v1647_v12, %v1660_v52 }
 0x2d8   :  { %v1720_v43 = vmax.f32 %v1705_v16, %v1706_v14  ;;  %v1689_v9 = vmul.f32 %v3801_v3, %v1671_v39 }
 0x2da   :  { %v1707_v26 = vadd.f32 %v3807_v33, %v1689_v9 }
 0x2dc   :  { %v1721_v6 = vmax.f32 %v1720_v43, %v1707_v26 }
 0x2de   :  { %1722 = vst [vmem:[%s3860_s8 + $0x20] sm:$0xff] %v1721_v6 }

</bundles_post_ra>
